<compile_context>
chip_gen: v7x
topology: tpu7x:2x2x1
jax: 0.10.0
libtpu: 0.0.40
codegen_flags: <defaults>
</compile_context>

<pallas_src>
import numpy as np
import jax
import jax.numpy as jnp
from jax.experimental import pallas as pl
from jax.experimental.pallas import tpu as pltpu

# ----------------------------- model sizes (small) -----------------------------
VOCAB = 16
EMBED = 32      # embed_dim
HIDDEN = 32     # hidden_dim per direction
OUT = 32        # output_dim
B = 2           # logical batch
BP = 8          # batch padded to one f32 sublane tile
T = 8           # max_len
OUTP = 128      # output columns padded to one lane-dense row

H = HIDDEN
H2, H4, H8, H16 = 2 * H, 4 * H, 8 * H, 16 * H

# forward-direction gate columns in the gate-major / direction-minor layout
_FWD_COLS = (np.arange(H8) & H) == 0


# ----------------------------- Pallas kernel -----------------------------------
def seq_encoder_kernel(xg0_ref, mask_ref, w_ref, b_ref, out_ref):
    # xg0_ref : [T*BP, 8H] f32  per-step combined layer-0 input gates (bias folded):
    #           fwd gate cols from time t=s, bwd gate cols from time t=T-1-s.
    # mask_ref: [T*BP, 2H] f32  per-step combined mask [valid(t=s) | valid(t=T-1-s)].
    # w_ref   : [6H, 16H] bf16  weight slab:
    #             rows 0:2H                -> block-diag layer-1 input-projection fold
    #             rows 2H:4H, cols 0:8H    -> whh layer0 (block-diag fwd/bwd, gate-major)
    #             rows 2H:4H, cols 8H:16H  -> whh layer1
    #             rows 4H:6H, cols 0:128   -> w_fc padded to 128 output cols
    # b_ref   : [1, 16H] f32   cols 0:8H layer-1 packed bias, cols 8H:8H+128 fc bias.
    # out_ref : [BP, 128] f32  relu(fc) with padded output cols.
    mask = mask_ref[...] != 0.0                         # [T*BP, 2H] bool

    w1fold = w_ref[0:H2, :]                             # [2H, 16H] bf16
    whh0 = w_ref[H2:2 * H2, 0:H8]                       # [2H, 8H]  bf16
    whh1 = w_ref[H2:2 * H2, H8:H16]                     # [2H, 8H]  bf16
    wfc = w_ref[2 * H2:3 * H2, 0:OUTP]                  # [2H, 128] bf16
    b1 = b_ref[0:1, 0:H8]                               # [1, 8H]   f32
    bfc = b_ref[0:1, H8:H8 + OUTP]                      # [1, 128]  f32

    def cell(gates, c_prev):
        # gate-major / direction-minor: i|f|g|o blocks of width 2H = [fwd H | bwd H]
        i = jax.nn.sigmoid(gates[:, 0:H2])
        f = jax.nn.sigmoid(gates[:, H2:2 * H2])
        g = jnp.tanh(gates[:, 2 * H2:3 * H2])
        o = jax.nn.sigmoid(gates[:, 3 * H2:4 * H2])
        c_new = f * c_prev + i * g
        return o * jnp.tanh(c_new), c_new

    # ---------------- layer 0: fwd+bwd fused, statically unrolled (T = 8) ------------
    h = jnp.zeros((BP, H2), jnp.float32)
    c = jnp.zeros((BP, H2), jnp.float32)
    # per-time layer-1 input gates, accumulated inside the layer-0 loop (bias pre-added)
    xg1 = [jnp.broadcast_to(b1, (BP, H8))] * T
    for s in range(T):
        rec = jnp.dot(h.astype(jnp.bfloat16), whh0, preferred_element_type=jnp.float32)
        gates = xg0_ref[s * BP:(s + 1) * BP, :] + rec
        h_new, c_new = cell(gates, c)
        m = mask[s * BP:(s + 1) * BP, :]
        h = jnp.where(m, h_new, h)
        c = jnp.where(m, c_new, c)
        # fold the layer-1 input projection (off the recurrent dependence chain):
        # p[:, :8H] -> contribution of fwd output (time s); p[:, 8H:] -> bwd output (time T-1-s)
        p = jnp.dot(h.astype(jnp.bfloat16), w1fold, preferred_element_type=jnp.float32)
        xg1[s] = xg1[s] + p[:, 0:H8]
        xg1[T - 1 - s] = xg1[T - 1 - s] + p[:, H8:H16]

    # ---------------- layer 1: fwd+bwd fused, statically unrolled ---------------------
    col = jax.lax.broadcasted_iota(jnp.int32, (BP, H8), 1)
    fwd_cols = (col & H) == 0                           # fwd gate columns
    h = jnp.zeros((BP, H2), jnp.float32)
    c = jnp.zeros((BP, H2), jnp.float32)
    for s in range(T):
        xg_in = jnp.where(fwd_cols, xg1[s], xg1[T - 1 - s])
        rec = jnp.dot(h.astype(jnp.bfloat16), whh1, preferred_element_type=jnp.float32)
        h_new, c_new = cell(xg_in + rec, c)
        m = mask[s * BP:(s + 1) * BP, :]
        h = jnp.where(m, h_new, h)
        c = jnp.where(m, c_new, c)

    # ---------------- final FC + ReLU: final_hidden == [h1_fwd | h1_bwd] == h --------
    y = jnp.dot(h.astype(jnp.bfloat16), wfc, preferred_element_type=jnp.float32) + bfc
    out_ref[...] = jnp.maximum(y, 0.0)


# ----------------------------- one-time packing ----------------------------------
def prepare_packed(params):
    """Pack PyTorch-layout LSTM/FC params into kernel operands ONCE (hoisted out of the
    per-call wrapper)."""
    p = {k: np.asarray(v, np.float32) for k, v in params.items()}

    def pack_ih(layer):
        wf, wb = p[f"w_ih_{layer}f"].T, p[f"w_ih_{layer}b"].T           # [in, 4H]
        cols = []
        for g in range(4):
            cols += [wf[:, g * H:(g + 1) * H], wb[:, g * H:(g + 1) * H]]
        return np.concatenate(cols, axis=1)                             # [in, 8H]

    def pack_hh(layer):
        whf, whb = p[f"w_hh_{layer}f"].T, p[f"w_hh_{layer}b"].T         # [H, 4H]
        out = np.zeros((H2, H8), np.float32)
        for g in range(4):
            out[0:H, g * H2:g * H2 + H] = whf[:, g * H:(g + 1) * H]
            out[H:H2, g * H2 + H:(g + 1) * H2] = whb[:, g * H:(g + 1) * H]
        return out

    def pack_b(layer):
        bf = p[f"b_ih_{layer}f"] + p[f"b_hh_{layer}f"]
        bb = p[f"b_ih_{layer}b"] + p[f"b_hh_{layer}b"]
        cols = []
        for g in range(4):
            cols += [bf[g * H:(g + 1) * H], bb[g * H:(g + 1) * H]]
        return np.concatenate(cols)                                     # [8H]

    # embedding table pre-fused with the layer-0 input projection (+ bias), kept f32
    fused_tab = p["emb_table"] @ pack_ih("l0") + pack_b("l0")[None, :]  # [VOCAB, 8H]

    # block-diagonal layer-1 input-projection fold weight [2H, 16H]
    wih1 = pack_ih("l1")                                                # [2H, 8H]
    w1fold = np.zeros((H2, H16), np.float32)
    w1fold[0:H, 0:H8] = wih1[0:H]
    w1fold[H:H2, H8:H16] = wih1[H:H2]

    w_slab = np.zeros((3 * H2, H16), np.float32)
    w_slab[0:H2, :] = w1fold
    w_slab[H2:2 * H2, 0:H8] = pack_hh("l0")
    w_slab[H2:2 * H2, H8:H16] = pack_hh("l1")
    w_slab[2 * H2:3 * H2, 0:OUT] = p["w_fc"].T

    b_slab = np.zeros((1, H16), np.float32)
    b_slab[0, 0:H8] = pack_b("l1")
    b_slab[0, H8:H8 + OUT] = p["b_fc"]

    return (jnp.asarray(fused_tab, jnp.float32),
            jnp.asarray(w_slab, jnp.bfloat16),
            jnp.asarray(b_slab, jnp.float32))


# ----------------------------- wrapper ------------------------------------------
@jax.jit
def sequence_encoder_forward(sequences, lengths, fused_tab, w_slab, b_slab):
    """sequences: [B, T] int32, lengths: [B] int32 (>=1) -> [B, OUT] float32."""
    # pad batch to BP rows (padded rows get length 0 -> state frozen at zero)
    seq_p = jnp.zeros((BP, T), jnp.int32).at[:B].set(sequences)
    len_p = jnp.zeros((BP,), jnp.int32).at[:B].set(lengths)

    # gather pre-fused layer-0 input gates time-major, then build per-step combined rows:
    # fwd gate columns from time s, bwd gate columns from time T-1-s.
    xg_all = fused_tab[seq_p.T.reshape(-1)].reshape(T, BP, H8)          # [T, BP, 8H]
    fwd_cols = jnp.asarray(_FWD_COLS)
    xg0 = jnp.where(fwd_cols[None, None, :], xg_all, xg_all[::-1]).reshape(T * BP, H8)

    # per-step combined validity mask [valid(t=s) | valid(t=T-1-s)]
    valid = (jnp.arange(T)[:, None] < len_p[None, :]).astype(jnp.float32)   # [T, BP]
    m_f = jnp.broadcast_to(valid[:, :, None], (T, BP, H))
    m_b = jnp.broadcast_to(valid[::-1][:, :, None], (T, BP, H))
    mask2 = jnp.concatenate([m_f, m_b], axis=2).reshape(T * BP, H2)

    vmem = pl.BlockSpec(memory_space=pltpu.MemorySpace.VMEM)
    out = pl.pallas_call(
        seq_encoder_kernel,
        out_shape=jax.ShapeDtypeStruct((BP, OUTP), jnp.float32),
        in_specs=[vmem] * 4,
        out_specs=vmem,
    )(xg0, mask2, w_slab, b_slab)
    return out[:B, :OUT]


# ----------------------------- numpy reference -----------------------------------
def _sigmoid(x):
    return 1.0 / (1.0 + np.exp(-x))


def reference_forward(sequences, lengths, params):
    emb = np.asarray(params["emb_table"])[np.asarray(sequences)]      # [B,T,E]
    mask = (np.arange(T)[None, :] < np.asarray(lengths)[:, None]).astype(np.float32)  # [B,T]

    def run_dir(x_seq, wih, whh, bih, bhh, reverse):
        h = np.zeros((B, H), np.float32)
        c = np.zeros((B, H), np.float32)
        outs = np.zeros((B, T, H), np.float32)
        ts = range(T - 1, -1, -1) if reverse else range(T)
        for t in ts:
            x = x_seq[:, t]
            g = x @ wih.T + bih + h @ whh.T + bhh
            i, f = _sigmoid(g[:, :H]), _sigmoid(g[:, H:2 * H])
            gg, o = np.tanh(g[:, 2 * H:3 * H]), _sigmoid(g[:, 3 * H:4 * H])
            cn = f * c + i * gg
            hn = o * np.tanh(cn)
            m = mask[:, t:t + 1]
            h = m * hn + (1.0 - m) * h
            c = m * cn + (1.0 - m) * c
            outs[:, t] = h
        return outs, h

    p = {k: np.asarray(v, np.float32) for k, v in params.items()}
    o0f, _ = run_dir(emb, p["w_ih_l0f"], p["w_hh_l0f"], p["b_ih_l0f"], p["b_hh_l0f"], False)
    o0b, _ = run_dir(emb, p["w_ih_l0b"], p["w_hh_l0b"], p["b_ih_l0b"], p["b_hh_l0b"], True)
    x1 = np.concatenate([o0f, o0b], axis=-1)
    _, hf = run_dir(x1, p["w_ih_l1f"], p["w_hh_l1f"], p["b_ih_l1f"], p["b_hh_l1f"], False)
    _, hb = run_dir(x1, p["w_ih_l1b"], p["w_hh_l1b"], p["b_ih_l1b"], p["b_hh_l1b"], True)
    final = np.concatenate([hf, hb], axis=-1)
    y = final @ p["w_fc"].T + p["b_fc"]
    return np.maximum(y, 0.0)


# ----------------------------- parameter init ------------------------------------
def init_params(key):
    k = 1.0 / np.sqrt(HIDDEN)
    params = {}
    keys = jax.random.split(key, 32)
    ki = iter(keys)
    params["emb_table"] = jax.random.normal(next(ki), (VOCAB, EMBED), jnp.float32) * 0.1

    def u(key, shape):
        return jax.random.uniform(key, shape, jnp.float32, -k, k)

    layer_in = {"l0": EMBED, "l1": 2 * HIDDEN}
    for layer in ("l0", "l1"):
        for d in ("f", "b"):
            tag = f"{layer}{d}"
            params[f"w_ih_{tag}"] = u(next(ki), (4 * HIDDEN, layer_in[layer]))
            params[f"w_hh_{tag}"] = u(next(ki), (4 * HIDDEN, HIDDEN))
            params[f"b_ih_{tag}"] = u(next(ki), (4 * HIDDEN,))
            params[f"b_hh_{tag}"] = u(next(ki), (4 * HIDDEN,))
    params["w_fc"] = u(next(ki), (OUT, 2 * HIDDEN))
    params["b_fc"] = u(next(ki), (OUT,))
    return params


# ----------------------------- main -----------------------------------------------
if __name__ == "__main__":
    key = jax.random.PRNGKey(0)
    pkey, skey = jax.random.split(key)
    params = init_params(pkey)
    fused_tab, w_slab, b_slab = prepare_packed(params)   # one-time packing

    sequences = jax.random.randint(skey, (B, T), 0, VOCAB, dtype=jnp.int32)
    lengths = jnp.array([T, 5], dtype=jnp.int32)          # padded lengths (must be >= 1)

    out = sequence_encoder_forward(sequences, lengths, fused_tab, w_slab, b_slab)
    out = jax.block_until_ready(out)

    ref = reference_forward(sequences, lengths, params)
    assert out.shape == (B, OUT), out.shape
    # bf16 MXU operands with f32 accumulation: tolerance tightened vs. previous 5e-2.
    np.testing.assert_allclose(np.asarray(out), ref, atol=2e-2, rtol=2e-2)

    print("KERNEL_OK")
</pallas_src>

<mosaic_0001>
module attributes {stable_mosaic.version = 11 : i64} {
  func.func @seq_encoder_kernel(%arg0: memref<64x256xf32, #tpu.memory_space<vmem>>, %arg1: memref<64x64xf32, #tpu.memory_space<vmem>>, %arg2: memref<192x512xbf16, #tpu.memory_space<vmem>>, %arg3: memref<1x512xf32, #tpu.memory_space<vmem>>, %arg4: memref<8x128xf32, #tpu.memory_space<vmem>>) attributes {dimension_semantics = [], scalar_prefetch = 0 : i64, scratch_operands = 0 : i64, tpu.core_type = #tpu.core_type<tc>} {
    %c0 = arith.constant 0 : index
    %c0_0 = arith.constant 0 : index
    %0 = vector.load %arg1[%c0, %c0_0] : memref<64x64xf32, #tpu.memory_space<vmem>>, vector<64x64xf32>
    %cst = arith.constant 0.000000e+00 : f32
    %1 = vector.broadcast %cst : f32 to vector<64x64xf32>
    %2 = arith.cmpf one, %0, %1 : vector<64x64xf32>
    %c0_1 = arith.constant 0 : index
    %c0_2 = arith.constant 0 : index
    %3 = vector.load %arg2[%c0_1, %c0_2] : memref<192x512xbf16, #tpu.memory_space<vmem>>, vector<64x512xbf16>
    %c64 = arith.constant 64 : index
    %c0_3 = arith.constant 0 : index
    %4 = vector.load %arg2[%c64, %c0_3] : memref<192x512xbf16, #tpu.memory_space<vmem>>, vector<64x256xbf16>
    %c64_4 = arith.constant 64 : index
    %c256 = arith.constant 256 : index
    %5 = vector.load %arg2[%c64_4, %c256] : memref<192x512xbf16, #tpu.memory_space<vmem>>, vector<64x256xbf16>
    %c128 = arith.constant 128 : index
    %c0_5 = arith.constant 0 : index
    %6 = vector.load %arg2[%c128, %c0_5] : memref<192x512xbf16, #tpu.memory_space<vmem>>, vector<64x128xbf16>
    %c0_6 = arith.constant 0 : index
    %c0_7 = arith.constant 0 : index
    %7 = vector.load %arg3[%c0_6, %c0_7] : memref<1x512xf32, #tpu.memory_space<vmem>>, vector<1x256xf32>
    %c0_8 = arith.constant 0 : index
    %c256_9 = arith.constant 256 : index
    %8 = vector.load %arg3[%c0_8, %c256_9] : memref<1x512xf32, #tpu.memory_space<vmem>>, vector<1x128xf32>
    %cst_10 = arith.constant 0.000000e+00 : f32
    %9 = vector.broadcast %cst_10 : f32 to vector<8x64xf32>
    %cst_11 = arith.constant 0.000000e+00 : f32
    %10 = vector.broadcast %cst_11 : f32 to vector<8x64xf32>
    %11 = vector.shape_cast %7 : vector<1x256xf32> to vector<1x256xf32>
    %12 = vector.broadcast %11 : vector<1x256xf32> to vector<8x256xf32>
    %13 = arith.truncf %9 : vector<8x64xf32> to vector<8x64xbf16>
    %cst_12 = arith.constant dense<0.000000e+00> : vector<8x256xf32>
    %14 = tpu.matmul %13, %4, %cst_12 {dimension_numbers = #tpu.dot_dimension_numbers<[1], [0], [0], [1], [0, 0, 1, 1], [], []>} : vector<8x64xbf16>, vector<64x256xbf16>, vector<8x256xf32> -> vector<8x256xf32>
    %c0_13 = arith.constant 0 : index
    %c0_14 = arith.constant 0 : index
    %15 = vector.load %arg0[%c0_13, %c0_14] : memref<64x256xf32, #tpu.memory_space<vmem>>, vector<8x256xf32>
    %16 = arith.addf %15, %14 : vector<8x256xf32>
    %17 = vector.extract_strided_slice %16 {offsets = [0, 0], sizes = [8, 64], strides = [1, 1]} : vector<8x256xf32> to vector<8x64xf32>
    %18 = arith.negf %17 : vector<8x64xf32>
    %19 = math.exp %18 : vector<8x64xf32>
    %cst_15 = arith.constant 1.000000e+00 : f32
    %20 = vector.broadcast %cst_15 : f32 to vector<8x64xf32>
    %21 = arith.addf %20, %19 : vector<8x64xf32>
    %22 = arith.divf %20, %21 : vector<8x64xf32>
    %23 = vector.extract_strided_slice %16 {offsets = [0, 64], sizes = [8, 64], strides = [1, 1]} : vector<8x256xf32> to vector<8x64xf32>
    %24 = arith.negf %23 : vector<8x64xf32>
    %25 = math.exp %24 : vector<8x64xf32>
    %cst_16 = arith.constant 1.000000e+00 : f32
    %26 = vector.broadcast %cst_16 : f32 to vector<8x64xf32>
    %27 = arith.addf %26, %25 : vector<8x64xf32>
    %28 = arith.divf %26, %27 : vector<8x64xf32>
    %29 = vector.extract_strided_slice %16 {offsets = [0, 128], sizes = [8, 64], strides = [1, 1]} : vector<8x256xf32> to vector<8x64xf32>
    %30 = math.tanh %29 : vector<8x64xf32>
    %31 = vector.extract_strided_slice %16 {offsets = [0, 192], sizes = [8, 64], strides = [1, 1]} : vector<8x256xf32> to vector<8x64xf32>
    %32 = arith.negf %31 : vector<8x64xf32>
    %33 = math.exp %32 : vector<8x64xf32>
    %cst_17 = arith.constant 1.000000e+00 : f32
    %34 = vector.broadcast %cst_17 : f32 to vector<8x64xf32>
    %35 = arith.addf %34, %33 : vector<8x64xf32>
    %36 = arith.divf %34, %35 : vector<8x64xf32>
    %37 = arith.mulf %28, %10 : vector<8x64xf32>
    %38 = arith.mulf %22, %30 : vector<8x64xf32>
    %39 = arith.addf %37, %38 : vector<8x64xf32>
    %40 = math.tanh %39 : vector<8x64xf32>
    %41 = arith.mulf %36, %40 : vector<8x64xf32>
    %42 = vector.extract_strided_slice %2 {offsets = [0, 0], sizes = [8, 64], strides = [1, 1]} : vector<64x64xi1> to vector<8x64xi1>
    %43 = arith.select %42, %41, %9 : vector<8x64xi1>, vector<8x64xf32>
    %44 = arith.select %42, %39, %10 : vector<8x64xi1>, vector<8x64xf32>
    %45 = arith.truncf %43 : vector<8x64xf32> to vector<8x64xbf16>
    %cst_18 = arith.constant dense<0.000000e+00> : vector<8x512xf32>
    %46 = tpu.matmul %45, %3, %cst_18 {dimension_numbers = #tpu.dot_dimension_numbers<[1], [0], [0], [1], [0, 0, 1, 1], [], []>} : vector<8x64xbf16>, vector<64x512xbf16>, vector<8x512xf32> -> vector<8x512xf32>
    %47 = vector.extract_strided_slice %46 {offsets = [0, 0], sizes = [8, 256], strides = [1, 1]} : vector<8x512xf32> to vector<8x256xf32>
    %48 = arith.addf %12, %47 : vector<8x256xf32>
    %49 = vector.extract_strided_slice %46 {offsets = [0, 256], sizes = [8, 256], strides = [1, 1]} : vector<8x512xf32> to vector<8x256xf32>
    %50 = arith.addf %12, %49 : vector<8x256xf32>
    %51 = arith.truncf %43 : vector<8x64xf32> to vector<8x64xbf16>
    %cst_19 = arith.constant dense<0.000000e+00> : vector<8x256xf32>
    %52 = tpu.matmul %51, %4, %cst_19 {dimension_numbers = #tpu.dot_dimension_numbers<[1], [0], [0], [1], [0, 0, 1, 1], [], []>} : vector<8x64xbf16>, vector<64x256xbf16>, vector<8x256xf32> -> vector<8x256xf32>
    %c8 = arith.constant 8 : index
    %c0_20 = arith.constant 0 : index
    %53 = vector.load %arg0[%c8, %c0_20] : memref<64x256xf32, #tpu.memory_space<vmem>>, vector<8x256xf32>
    %54 = arith.addf %53, %52 : vector<8x256xf32>
    %55 = vector.extract_strided_slice %54 {offsets = [0, 0], sizes = [8, 64], strides = [1, 1]} : vector<8x256xf32> to vector<8x64xf32>
    %56 = arith.negf %55 : vector<8x64xf32>
    %57 = math.exp %56 : vector<8x64xf32>
    %cst_21 = arith.constant 1.000000e+00 : f32
    %58 = vector.broadcast %cst_21 : f32 to vector<8x64xf32>
    %59 = arith.addf %58, %57 : vector<8x64xf32>
    %60 = arith.divf %58, %59 : vector<8x64xf32>
    %61 = vector.extract_strided_slice %54 {offsets = [0, 64], sizes = [8, 64], strides = [1, 1]} : vector<8x256xf32> to vector<8x64xf32>
    %62 = arith.negf %61 : vector<8x64xf32>
    %63 = math.exp %62 : vector<8x64xf32>
    %cst_22 = arith.constant 1.000000e+00 : f32
    %64 = vector.broadcast %cst_22 : f32 to vector<8x64xf32>
    %65 = arith.addf %64, %63 : vector<8x64xf32>
    %66 = arith.divf %64, %65 : vector<8x64xf32>
    %67 = vector.extract_strided_slice %54 {offsets = [0, 128], sizes = [8, 64], strides = [1, 1]} : vector<8x256xf32> to vector<8x64xf32>
    %68 = math.tanh %67 : vector<8x64xf32>
    %69 = vector.extract_strided_slice %54 {offsets = [0, 192], sizes = [8, 64], strides = [1, 1]} : vector<8x256xf32> to vector<8x64xf32>
    %70 = arith.negf %69 : vector<8x64xf32>
    %71 = math.exp %70 : vector<8x64xf32>
    %cst_23 = arith.constant 1.000000e+00 : f32
    %72 = vector.broadcast %cst_23 : f32 to vector<8x64xf32>
    %73 = arith.addf %72, %71 : vector<8x64xf32>
    %74 = arith.divf %72, %73 : vector<8x64xf32>
    %75 = arith.mulf %66, %44 : vector<8x64xf32>
    %76 = arith.mulf %60, %68 : vector<8x64xf32>
    %77 = arith.addf %75, %76 : vector<8x64xf32>
    %78 = math.tanh %77 : vector<8x64xf32>
    %79 = arith.mulf %74, %78 : vector<8x64xf32>
    %80 = vector.extract_strided_slice %2 {offsets = [8, 0], sizes = [8, 64], strides = [1, 1]} : vector<64x64xi1> to vector<8x64xi1>
    %81 = arith.select %80, %79, %43 : vector<8x64xi1>, vector<8x64xf32>
    %82 = arith.select %80, %77, %44 : vector<8x64xi1>, vector<8x64xf32>
    %83 = arith.truncf %81 : vector<8x64xf32> to vector<8x64xbf16>
    %cst_24 = arith.constant dense<0.000000e+00> : vector<8x512xf32>
    %84 = tpu.matmul %83, %3, %cst_24 {dimension_numbers = #tpu.dot_dimension_numbers<[1], [0], [0], [1], [0, 0, 1, 1], [], []>} : vector<8x64xbf16>, vector<64x512xbf16>, vector<8x512xf32> -> vector<8x512xf32>
    %85 = vector.extract_strided_slice %84 {offsets = [0, 0], sizes = [8, 256], strides = [1, 1]} : vector<8x512xf32> to vector<8x256xf32>
    %86 = arith.addf %12, %85 : vector<8x256xf32>
    %87 = vector.extract_strided_slice %84 {offsets = [0, 256], sizes = [8, 256], strides = [1, 1]} : vector<8x512xf32> to vector<8x256xf32>
    %88 = arith.addf %12, %87 : vector<8x256xf32>
    %89 = arith.truncf %81 : vector<8x64xf32> to vector<8x64xbf16>
    %cst_25 = arith.constant dense<0.000000e+00> : vector<8x256xf32>
    %90 = tpu.matmul %89, %4, %cst_25 {dimension_numbers = #tpu.dot_dimension_numbers<[1], [0], [0], [1], [0, 0, 1, 1], [], []>} : vector<8x64xbf16>, vector<64x256xbf16>, vector<8x256xf32> -> vector<8x256xf32>
    %c16 = arith.constant 16 : index
    %c0_26 = arith.constant 0 : index
    %91 = vector.load %arg0[%c16, %c0_26] : memref<64x256xf32, #tpu.memory_space<vmem>>, vector<8x256xf32>
    %92 = arith.addf %91, %90 : vector<8x256xf32>
    %93 = vector.extract_strided_slice %92 {offsets = [0, 0], sizes = [8, 64], strides = [1, 1]} : vector<8x256xf32> to vector<8x64xf32>
    %94 = arith.negf %93 : vector<8x64xf32>
    %95 = math.exp %94 : vector<8x64xf32>
    %cst_27 = arith.constant 1.000000e+00 : f32
    %96 = vector.broadcast %cst_27 : f32 to vector<8x64xf32>
    %97 = arith.addf %96, %95 : vector<8x64xf32>
    %98 = arith.divf %96, %97 : vector<8x64xf32>
    %99 = vector.extract_strided_slice %92 {offsets = [0, 64], sizes = [8, 64], strides = [1, 1]} : vector<8x256xf32> to vector<8x64xf32>
    %100 = arith.negf %99 : vector<8x64xf32>
    %101 = math.exp %100 : vector<8x64xf32>
    %cst_28 = arith.constant 1.000000e+00 : f32
    %102 = vector.broadcast %cst_28 : f32 to vector<8x64xf32>
    %103 = arith.addf %102, %101 : vector<8x64xf32>
    %104 = arith.divf %102, %103 : vector<8x64xf32>
    %105 = vector.extract_strided_slice %92 {offsets = [0, 128], sizes = [8, 64], strides = [1, 1]} : vector<8x256xf32> to vector<8x64xf32>
    %106 = math.tanh %105 : vector<8x64xf32>
    %107 = vector.extract_strided_slice %92 {offsets = [0, 192], sizes = [8, 64], strides = [1, 1]} : vector<8x256xf32> to vector<8x64xf32>
    %108 = arith.negf %107 : vector<8x64xf32>
    %109 = math.exp %108 : vector<8x64xf32>
    %cst_29 = arith.constant 1.000000e+00 : f32
    %110 = vector.broadcast %cst_29 : f32 to vector<8x64xf32>
    %111 = arith.addf %110, %109 : vector<8x64xf32>
    %112 = arith.divf %110, %111 : vector<8x64xf32>
    %113 = arith.mulf %104, %82 : vector<8x64xf32>
    %114 = arith.mulf %98, %106 : vector<8x64xf32>
    %115 = arith.addf %113, %114 : vector<8x64xf32>
    %116 = math.tanh %115 : vector<8x64xf32>
    %117 = arith.mulf %112, %116 : vector<8x64xf32>
    %118 = vector.extract_strided_slice %2 {offsets = [16, 0], sizes = [8, 64], strides = [1, 1]} : vector<64x64xi1> to vector<8x64xi1>
    %119 = arith.select %118, %117, %81 : vector<8x64xi1>, vector<8x64xf32>
    %120 = arith.select %118, %115, %82 : vector<8x64xi1>, vector<8x64xf32>
    %121 = arith.truncf %119 : vector<8x64xf32> to vector<8x64xbf16>
    %cst_30 = arith.constant dense<0.000000e+00> : vector<8x512xf32>
    %122 = tpu.matmul %121, %3, %cst_30 {dimension_numbers = #tpu.dot_dimension_numbers<[1], [0], [0], [1], [0, 0, 1, 1], [], []>} : vector<8x64xbf16>, vector<64x512xbf16>, vector<8x512xf32> -> vector<8x512xf32>
    %123 = vector.extract_strided_slice %122 {offsets = [0, 0], sizes = [8, 256], strides = [1, 1]} : vector<8x512xf32> to vector<8x256xf32>
    %124 = arith.addf %12, %123 : vector<8x256xf32>
    %125 = vector.extract_strided_slice %122 {offsets = [0, 256], sizes = [8, 256], strides = [1, 1]} : vector<8x512xf32> to vector<8x256xf32>
    %126 = arith.addf %12, %125 : vector<8x256xf32>
    %127 = arith.truncf %119 : vector<8x64xf32> to vector<8x64xbf16>
    %cst_31 = arith.constant dense<0.000000e+00> : vector<8x256xf32>
    %128 = tpu.matmul %127, %4, %cst_31 {dimension_numbers = #tpu.dot_dimension_numbers<[1], [0], [0], [1], [0, 0, 1, 1], [], []>} : vector<8x64xbf16>, vector<64x256xbf16>, vector<8x256xf32> -> vector<8x256xf32>
    %c24 = arith.constant 24 : index
    %c0_32 = arith.constant 0 : index
    %129 = vector.load %arg0[%c24, %c0_32] : memref<64x256xf32, #tpu.memory_space<vmem>>, vector<8x256xf32>
    %130 = arith.addf %129, %128 : vector<8x256xf32>
    %131 = vector.extract_strided_slice %130 {offsets = [0, 0], sizes = [8, 64], strides = [1, 1]} : vector<8x256xf32> to vector<8x64xf32>
    %132 = arith.negf %131 : vector<8x64xf32>
    %133 = math.exp %132 : vector<8x64xf32>
    %cst_33 = arith.constant 1.000000e+00 : f32
    %134 = vector.broadcast %cst_33 : f32 to vector<8x64xf32>
    %135 = arith.addf %134, %133 : vector<8x64xf32>
    %136 = arith.divf %134, %135 : vector<8x64xf32>
    %137 = vector.extract_strided_slice %130 {offsets = [0, 64], sizes = [8, 64], strides = [1, 1]} : vector<8x256xf32> to vector<8x64xf32>
    %138 = arith.negf %137 : vector<8x64xf32>
    %139 = math.exp %138 : vector<8x64xf32>
    %cst_34 = arith.constant 1.000000e+00 : f32
    %140 = vector.broadcast %cst_34 : f32 to vector<8x64xf32>
    %141 = arith.addf %140, %139 : vector<8x64xf32>
    %142 = arith.divf %140, %141 : vector<8x64xf32>
    %143 = vector.extract_strided_slice %130 {offsets = [0, 128], sizes = [8, 64], strides = [1, 1]} : vector<8x256xf32> to vector<8x64xf32>
    %144 = math.tanh %143 : vector<8x64xf32>
    %145 = vector.extract_strided_slice %130 {offsets = [0, 192], sizes = [8, 64], strides = [1, 1]} : vector<8x256xf32> to vector<8x64xf32>
    %146 = arith.negf %145 : vector<8x64xf32>
    %147 = math.exp %146 : vector<8x64xf32>
    %cst_35 = arith.constant 1.000000e+00 : f32
    %148 = vector.broadcast %cst_35 : f32 to vector<8x64xf32>
    %149 = arith.addf %148, %147 : vector<8x64xf32>
    %150 = arith.divf %148, %149 : vector<8x64xf32>
    %151 = arith.mulf %142, %120 : vector<8x64xf32>
    %152 = arith.mulf %136, %144 : vector<8x64xf32>
    %153 = arith.addf %151, %152 : vector<8x64xf32>
    %154 = math.tanh %153 : vector<8x64xf32>
    %155 = arith.mulf %150, %154 : vector<8x64xf32>
    %156 = vector.extract_strided_slice %2 {offsets = [24, 0], sizes = [8, 64], strides = [1, 1]} : vector<64x64xi1> to vector<8x64xi1>
    %157 = arith.select %156, %155, %119 : vector<8x64xi1>, vector<8x64xf32>
    %158 = arith.select %156, %153, %120 : vector<8x64xi1>, vector<8x64xf32>
    %159 = arith.truncf %157 : vector<8x64xf32> to vector<8x64xbf16>
    %cst_36 = arith.constant dense<0.000000e+00> : vector<8x512xf32>
    %160 = tpu.matmul %159, %3, %cst_36 {dimension_numbers = #tpu.dot_dimension_numbers<[1], [0], [0], [1], [0, 0, 1, 1], [], []>} : vector<8x64xbf16>, vector<64x512xbf16>, vector<8x512xf32> -> vector<8x512xf32>
    %161 = vector.extract_strided_slice %160 {offsets = [0, 0], sizes = [8, 256], strides = [1, 1]} : vector<8x512xf32> to vector<8x256xf32>
    %162 = arith.addf %12, %161 : vector<8x256xf32>
    %163 = vector.extract_strided_slice %160 {offsets = [0, 256], sizes = [8, 256], strides = [1, 1]} : vector<8x512xf32> to vector<8x256xf32>
    %164 = arith.addf %12, %163 : vector<8x256xf32>
    %165 = arith.truncf %157 : vector<8x64xf32> to vector<8x64xbf16>
    %cst_37 = arith.constant dense<0.000000e+00> : vector<8x256xf32>
    %166 = tpu.matmul %165, %4, %cst_37 {dimension_numbers = #tpu.dot_dimension_numbers<[1], [0], [0], [1], [0, 0, 1, 1], [], []>} : vector<8x64xbf16>, vector<64x256xbf16>, vector<8x256xf32> -> vector<8x256xf32>
    %c32 = arith.constant 32 : index
    %c0_38 = arith.constant 0 : index
    %167 = vector.load %arg0[%c32, %c0_38] : memref<64x256xf32, #tpu.memory_space<vmem>>, vector<8x256xf32>
    %168 = arith.addf %167, %166 : vector<8x256xf32>
    %169 = vector.extract_strided_slice %168 {offsets = [0, 0], sizes = [8, 64], strides = [1, 1]} : vector<8x256xf32> to vector<8x64xf32>
    %170 = arith.negf %169 : vector<8x64xf32>
    %171 = math.exp %170 : vector<8x64xf32>
    %cst_39 = arith.constant 1.000000e+00 : f32
    %172 = vector.broadcast %cst_39 : f32 to vector<8x64xf32>
    %173 = arith.addf %172, %171 : vector<8x64xf32>
    %174 = arith.divf %172, %173 : vector<8x64xf32>
    %175 = vector.extract_strided_slice %168 {offsets = [0, 64], sizes = [8, 64], strides = [1, 1]} : vector<8x256xf32> to vector<8x64xf32>
    %176 = arith.negf %175 : vector<8x64xf32>
    %177 = math.exp %176 : vector<8x64xf32>
    %cst_40 = arith.constant 1.000000e+00 : f32
    %178 = vector.broadcast %cst_40 : f32 to vector<8x64xf32>
    %179 = arith.addf %178, %177 : vector<8x64xf32>
    %180 = arith.divf %178, %179 : vector<8x64xf32>
    %181 = vector.extract_strided_slice %168 {offsets = [0, 128], sizes = [8, 64], strides = [1, 1]} : vector<8x256xf32> to vector<8x64xf32>
    %182 = math.tanh %181 : vector<8x64xf32>
    %183 = vector.extract_strided_slice %168 {offsets = [0, 192], sizes = [8, 64], strides = [1, 1]} : vector<8x256xf32> to vector<8x64xf32>
    %184 = arith.negf %183 : vector<8x64xf32>
    %185 = math.exp %184 : vector<8x64xf32>
    %cst_41 = arith.constant 1.000000e+00 : f32
    %186 = vector.broadcast %cst_41 : f32 to vector<8x64xf32>
    %187 = arith.addf %186, %185 : vector<8x64xf32>
    %188 = arith.divf %186, %187 : vector<8x64xf32>
    %189 = arith.mulf %180, %158 : vector<8x64xf32>
    %190 = arith.mulf %174, %182 : vector<8x64xf32>
    %191 = arith.addf %189, %190 : vector<8x64xf32>
    %192 = math.tanh %191 : vector<8x64xf32>
    %193 = arith.mulf %188, %192 : vector<8x64xf32>
    %194 = vector.extract_strided_slice %2 {offsets = [32, 0], sizes = [8, 64], strides = [1, 1]} : vector<64x64xi1> to vector<8x64xi1>
    %195 = arith.select %194, %193, %157 : vector<8x64xi1>, vector<8x64xf32>
    %196 = arith.select %194, %191, %158 : vector<8x64xi1>, vector<8x64xf32>
    %197 = arith.truncf %195 : vector<8x64xf32> to vector<8x64xbf16>
    %cst_42 = arith.constant dense<0.000000e+00> : vector<8x512xf32>
    %198 = tpu.matmul %197, %3, %cst_42 {dimension_numbers = #tpu.dot_dimension_numbers<[1], [0], [0], [1], [0, 0, 1, 1], [], []>} : vector<8x64xbf16>, vector<64x512xbf16>, vector<8x512xf32> -> vector<8x512xf32>
    %199 = vector.extract_strided_slice %198 {offsets = [0, 0], sizes = [8, 256], strides = [1, 1]} : vector<8x512xf32> to vector<8x256xf32>
    %200 = arith.addf %164, %199 : vector<8x256xf32>
    %201 = vector.extract_strided_slice %198 {offsets = [0, 256], sizes = [8, 256], strides = [1, 1]} : vector<8x512xf32> to vector<8x256xf32>
    %202 = arith.addf %162, %201 : vector<8x256xf32>
    %203 = arith.truncf %195 : vector<8x64xf32> to vector<8x64xbf16>
    %cst_43 = arith.constant dense<0.000000e+00> : vector<8x256xf32>
    %204 = tpu.matmul %203, %4, %cst_43 {dimension_numbers = #tpu.dot_dimension_numbers<[1], [0], [0], [1], [0, 0, 1, 1], [], []>} : vector<8x64xbf16>, vector<64x256xbf16>, vector<8x256xf32> -> vector<8x256xf32>
    %c40 = arith.constant 40 : index
    %c0_44 = arith.constant 0 : index
    %205 = vector.load %arg0[%c40, %c0_44] : memref<64x256xf32, #tpu.memory_space<vmem>>, vector<8x256xf32>
    %206 = arith.addf %205, %204 : vector<8x256xf32>
    %207 = vector.extract_strided_slice %206 {offsets = [0, 0], sizes = [8, 64], strides = [1, 1]} : vector<8x256xf32> to vector<8x64xf32>
    %208 = arith.negf %207 : vector<8x64xf32>
    %209 = math.exp %208 : vector<8x64xf32>
    %cst_45 = arith.constant 1.000000e+00 : f32
    %210 = vector.broadcast %cst_45 : f32 to vector<8x64xf32>
    %211 = arith.addf %210, %209 : vector<8x64xf32>
    %212 = arith.divf %210, %211 : vector<8x64xf32>
    %213 = vector.extract_strided_slice %206 {offsets = [0, 64], sizes = [8, 64], strides = [1, 1]} : vector<8x256xf32> to vector<8x64xf32>
    %214 = arith.negf %213 : vector<8x64xf32>
    %215 = math.exp %214 : vector<8x64xf32>
    %cst_46 = arith.constant 1.000000e+00 : f32
    %216 = vector.broadcast %cst_46 : f32 to vector<8x64xf32>
    %217 = arith.addf %216, %215 : vector<8x64xf32>
    %218 = arith.divf %216, %217 : vector<8x64xf32>
    %219 = vector.extract_strided_slice %206 {offsets = [0, 128], sizes = [8, 64], strides = [1, 1]} : vector<8x256xf32> to vector<8x64xf32>
    %220 = math.tanh %219 : vector<8x64xf32>
    %221 = vector.extract_strided_slice %206 {offsets = [0, 192], sizes = [8, 64], strides = [1, 1]} : vector<8x256xf32> to vector<8x64xf32>
    %222 = arith.negf %221 : vector<8x64xf32>
    %223 = math.exp %222 : vector<8x64xf32>
    %cst_47 = arith.constant 1.000000e+00 : f32
    %224 = vector.broadcast %cst_47 : f32 to vector<8x64xf32>
    %225 = arith.addf %224, %223 : vector<8x64xf32>
    %226 = arith.divf %224, %225 : vector<8x64xf32>
    %227 = arith.mulf %218, %196 : vector<8x64xf32>
    %228 = arith.mulf %212, %220 : vector<8x64xf32>
    %229 = arith.addf %227, %228 : vector<8x64xf32>
    %230 = math.tanh %229 : vector<8x64xf32>
    %231 = arith.mulf %226, %230 : vector<8x64xf32>
    %232 = vector.extract_strided_slice %2 {offsets = [40, 0], sizes = [8, 64], strides = [1, 1]} : vector<64x64xi1> to vector<8x64xi1>
    %233 = arith.select %232, %231, %195 : vector<8x64xi1>, vector<8x64xf32>
    %234 = arith.select %232, %229, %196 : vector<8x64xi1>, vector<8x64xf32>
    %235 = arith.truncf %233 : vector<8x64xf32> to vector<8x64xbf16>
    %cst_48 = arith.constant dense<0.000000e+00> : vector<8x512xf32>
    %236 = tpu.matmul %235, %3, %cst_48 {dimension_numbers = #tpu.dot_dimension_numbers<[1], [0], [0], [1], [0, 0, 1, 1], [], []>} : vector<8x64xbf16>, vector<64x512xbf16>, vector<8x512xf32> -> vector<8x512xf32>
    %237 = vector.extract_strided_slice %236 {offsets = [0, 0], sizes = [8, 256], strides = [1, 1]} : vector<8x512xf32> to vector<8x256xf32>
    %238 = arith.addf %126, %237 : vector<8x256xf32>
    %239 = vector.extract_strided_slice %236 {offsets = [0, 256], sizes = [8, 256], strides = [1, 1]} : vector<8x512xf32> to vector<8x256xf32>
    %240 = arith.addf %124, %239 : vector<8x256xf32>
    %241 = arith.truncf %233 : vector<8x64xf32> to vector<8x64xbf16>
    %cst_49 = arith.constant dense<0.000000e+00> : vector<8x256xf32>
    %242 = tpu.matmul %241, %4, %cst_49 {dimension_numbers = #tpu.dot_dimension_numbers<[1], [0], [0], [1], [0, 0, 1, 1], [], []>} : vector<8x64xbf16>, vector<64x256xbf16>, vector<8x256xf32> -> vector<8x256xf32>
    %c48 = arith.constant 48 : index
    %c0_50 = arith.constant 0 : index
    %243 = vector.load %arg0[%c48, %c0_50] : memref<64x256xf32, #tpu.memory_space<vmem>>, vector<8x256xf32>
    %244 = arith.addf %243, %242 : vector<8x256xf32>
    %245 = vector.extract_strided_slice %244 {offsets = [0, 0], sizes = [8, 64], strides = [1, 1]} : vector<8x256xf32> to vector<8x64xf32>
    %246 = arith.negf %245 : vector<8x64xf32>
    %247 = math.exp %246 : vector<8x64xf32>
    %cst_51 = arith.constant 1.000000e+00 : f32
    %248 = vector.broadcast %cst_51 : f32 to vector<8x64xf32>
    %249 = arith.addf %248, %247 : vector<8x64xf32>
    %250 = arith.divf %248, %249 : vector<8x64xf32>
    %251 = vector.extract_strided_slice %244 {offsets = [0, 64], sizes = [8, 64], strides = [1, 1]} : vector<8x256xf32> to vector<8x64xf32>
    %252 = arith.negf %251 : vector<8x64xf32>
    %253 = math.exp %252 : vector<8x64xf32>
    %cst_52 = arith.constant 1.000000e+00 : f32
    %254 = vector.broadcast %cst_52 : f32 to vector<8x64xf32>
    %255 = arith.addf %254, %253 : vector<8x64xf32>
    %256 = arith.divf %254, %255 : vector<8x64xf32>
    %257 = vector.extract_strided_slice %244 {offsets = [0, 128], sizes = [8, 64], strides = [1, 1]} : vector<8x256xf32> to vector<8x64xf32>
    %258 = math.tanh %257 : vector<8x64xf32>
    %259 = vector.extract_strided_slice %244 {offsets = [0, 192], sizes = [8, 64], strides = [1, 1]} : vector<8x256xf32> to vector<8x64xf32>
    %260 = arith.negf %259 : vector<8x64xf32>
    %261 = math.exp %260 : vector<8x64xf32>
    %cst_53 = arith.constant 1.000000e+00 : f32
    %262 = vector.broadcast %cst_53 : f32 to vector<8x64xf32>
    %263 = arith.addf %262, %261 : vector<8x64xf32>
    %264 = arith.divf %262, %263 : vector<8x64xf32>
    %265 = arith.mulf %256, %234 : vector<8x64xf32>
    %266 = arith.mulf %250, %258 : vector<8x64xf32>
    %267 = arith.addf %265, %266 : vector<8x64xf32>
    %268 = math.tanh %267 : vector<8x64xf32>
    %269 = arith.mulf %264, %268 : vector<8x64xf32>
    %270 = vector.extract_strided_slice %2 {offsets = [48, 0], sizes = [8, 64], strides = [1, 1]} : vector<64x64xi1> to vector<8x64xi1>
    %271 = arith.select %270, %269, %233 : vector<8x64xi1>, vector<8x64xf32>
    %272 = arith.select %270, %267, %234 : vector<8x64xi1>, vector<8x64xf32>
    %273 = arith.truncf %271 : vector<8x64xf32> to vector<8x64xbf16>
    %cst_54 = arith.constant dense<0.000000e+00> : vector<8x512xf32>
    %274 = tpu.matmul %273, %3, %cst_54 {dimension_numbers = #tpu.dot_dimension_numbers<[1], [0], [0], [1], [0, 0, 1, 1], [], []>} : vector<8x64xbf16>, vector<64x512xbf16>, vector<8x512xf32> -> vector<8x512xf32>
    %275 = vector.extract_strided_slice %274 {offsets = [0, 0], sizes = [8, 256], strides = [1, 1]} : vector<8x512xf32> to vector<8x256xf32>
    %276 = arith.addf %88, %275 : vector<8x256xf32>
    %277 = vector.extract_strided_slice %274 {offsets = [0, 256], sizes = [8, 256], strides = [1, 1]} : vector<8x512xf32> to vector<8x256xf32>
    %278 = arith.addf %86, %277 : vector<8x256xf32>
    %279 = arith.truncf %271 : vector<8x64xf32> to vector<8x64xbf16>
    %cst_55 = arith.constant dense<0.000000e+00> : vector<8x256xf32>
    %280 = tpu.matmul %279, %4, %cst_55 {dimension_numbers = #tpu.dot_dimension_numbers<[1], [0], [0], [1], [0, 0, 1, 1], [], []>} : vector<8x64xbf16>, vector<64x256xbf16>, vector<8x256xf32> -> vector<8x256xf32>
    %c56 = arith.constant 56 : index
    %c0_56 = arith.constant 0 : index
    %281 = vector.load %arg0[%c56, %c0_56] : memref<64x256xf32, #tpu.memory_space<vmem>>, vector<8x256xf32>
    %282 = arith.addf %281, %280 : vector<8x256xf32>
    %283 = vector.extract_strided_slice %282 {offsets = [0, 0], sizes = [8, 64], strides = [1, 1]} : vector<8x256xf32> to vector<8x64xf32>
    %284 = arith.negf %283 : vector<8x64xf32>
    %285 = math.exp %284 : vector<8x64xf32>
    %cst_57 = arith.constant 1.000000e+00 : f32
    %286 = vector.broadcast %cst_57 : f32 to vector<8x64xf32>
    %287 = arith.addf %286, %285 : vector<8x64xf32>
    %288 = arith.divf %286, %287 : vector<8x64xf32>
    %289 = vector.extract_strided_slice %282 {offsets = [0, 64], sizes = [8, 64], strides = [1, 1]} : vector<8x256xf32> to vector<8x64xf32>
    %290 = arith.negf %289 : vector<8x64xf32>
    %291 = math.exp %290 : vector<8x64xf32>
    %cst_58 = arith.constant 1.000000e+00 : f32
    %292 = vector.broadcast %cst_58 : f32 to vector<8x64xf32>
    %293 = arith.addf %292, %291 : vector<8x64xf32>
    %294 = arith.divf %292, %293 : vector<8x64xf32>
    %295 = vector.extract_strided_slice %282 {offsets = [0, 128], sizes = [8, 64], strides = [1, 1]} : vector<8x256xf32> to vector<8x64xf32>
    %296 = math.tanh %295 : vector<8x64xf32>
    %297 = vector.extract_strided_slice %282 {offsets = [0, 192], sizes = [8, 64], strides = [1, 1]} : vector<8x256xf32> to vector<8x64xf32>
    %298 = arith.negf %297 : vector<8x64xf32>
    %299 = math.exp %298 : vector<8x64xf32>
    %cst_59 = arith.constant 1.000000e+00 : f32
    %300 = vector.broadcast %cst_59 : f32 to vector<8x64xf32>
    %301 = arith.addf %300, %299 : vector<8x64xf32>
    %302 = arith.divf %300, %301 : vector<8x64xf32>
    %303 = arith.mulf %294, %272 : vector<8x64xf32>
    %304 = arith.mulf %288, %296 : vector<8x64xf32>
    %305 = arith.addf %303, %304 : vector<8x64xf32>
    %306 = math.tanh %305 : vector<8x64xf32>
    %307 = arith.mulf %302, %306 : vector<8x64xf32>
    %308 = vector.extract_strided_slice %2 {offsets = [56, 0], sizes = [8, 64], strides = [1, 1]} : vector<64x64xi1> to vector<8x64xi1>
    %309 = arith.select %308, %307, %271 : vector<8x64xi1>, vector<8x64xf32>
    %310 = arith.truncf %309 : vector<8x64xf32> to vector<8x64xbf16>
    %cst_60 = arith.constant dense<0.000000e+00> : vector<8x512xf32>
    %311 = tpu.matmul %310, %3, %cst_60 {dimension_numbers = #tpu.dot_dimension_numbers<[1], [0], [0], [1], [0, 0, 1, 1], [], []>} : vector<8x64xbf16>, vector<64x512xbf16>, vector<8x512xf32> -> vector<8x512xf32>
    %312 = vector.extract_strided_slice %311 {offsets = [0, 0], sizes = [8, 256], strides = [1, 1]} : vector<8x512xf32> to vector<8x256xf32>
    %313 = arith.addf %50, %312 : vector<8x256xf32>
    %314 = vector.extract_strided_slice %311 {offsets = [0, 256], sizes = [8, 256], strides = [1, 1]} : vector<8x512xf32> to vector<8x256xf32>
    %315 = arith.addf %48, %314 : vector<8x256xf32>
    %316 = tpu.iota {dimensions = array<i32: 1>} : vector<8x256xi32>
    %c32_i32 = arith.constant 32 : i32
    %317 = vector.broadcast %c32_i32 : i32 to vector<8x256xi32>
    %318 = arith.andi %316, %317 : vector<8x256xi32>
    %c0_i32 = arith.constant 0 : i32
    %319 = vector.broadcast %c0_i32 : i32 to vector<8x256xi32>
    %320 = arith.cmpi eq, %318, %319 : vector<8x256xi32>
    %cst_61 = arith.constant 0.000000e+00 : f32
    %321 = vector.broadcast %cst_61 : f32 to vector<8x64xf32>
    %cst_62 = arith.constant 0.000000e+00 : f32
    %322 = vector.broadcast %cst_62 : f32 to vector<8x64xf32>
    %323 = arith.select %320, %315, %313 : vector<8x256xi1>, vector<8x256xf32>
    %324 = arith.truncf %321 : vector<8x64xf32> to vector<8x64xbf16>
    %cst_63 = arith.constant dense<0.000000e+00> : vector<8x256xf32>
    %325 = tpu.matmul %324, %5, %cst_63 {dimension_numbers = #tpu.dot_dimension_numbers<[1], [0], [0], [1], [0, 0, 1, 1], [], []>} : vector<8x64xbf16>, vector<64x256xbf16>, vector<8x256xf32> -> vector<8x256xf32>
    %326 = arith.addf %323, %325 : vector<8x256xf32>
    %327 = vector.extract_strided_slice %326 {offsets = [0, 0], sizes = [8, 64], strides = [1, 1]} : vector<8x256xf32> to vector<8x64xf32>
    %328 = arith.negf %327 : vector<8x64xf32>
    %329 = math.exp %328 : vector<8x64xf32>
    %cst_64 = arith.constant 1.000000e+00 : f32
    %330 = vector.broadcast %cst_64 : f32 to vector<8x64xf32>
    %331 = arith.addf %330, %329 : vector<8x64xf32>
    %332 = arith.divf %330, %331 : vector<8x64xf32>
    %333 = vector.extract_strided_slice %326 {offsets = [0, 64], sizes = [8, 64], strides = [1, 1]} : vector<8x256xf32> to vector<8x64xf32>
    %334 = arith.negf %333 : vector<8x64xf32>
    %335 = math.exp %334 : vector<8x64xf32>
    %cst_65 = arith.constant 1.000000e+00 : f32
    %336 = vector.broadcast %cst_65 : f32 to vector<8x64xf32>
    %337 = arith.addf %336, %335 : vector<8x64xf32>
    %338 = arith.divf %336, %337 : vector<8x64xf32>
    %339 = vector.extract_strided_slice %326 {offsets = [0, 128], sizes = [8, 64], strides = [1, 1]} : vector<8x256xf32> to vector<8x64xf32>
    %340 = math.tanh %339 : vector<8x64xf32>
    %341 = vector.extract_strided_slice %326 {offsets = [0, 192], sizes = [8, 64], strides = [1, 1]} : vector<8x256xf32> to vector<8x64xf32>
    %342 = arith.negf %341 : vector<8x64xf32>
    %343 = math.exp %342 : vector<8x64xf32>
    %cst_66 = arith.constant 1.000000e+00 : f32
    %344 = vector.broadcast %cst_66 : f32 to vector<8x64xf32>
    %345 = arith.addf %344, %343 : vector<8x64xf32>
    %346 = arith.divf %344, %345 : vector<8x64xf32>
    %347 = arith.mulf %338, %322 : vector<8x64xf32>
    %348 = arith.mulf %332, %340 : vector<8x64xf32>
    %349 = arith.addf %347, %348 : vector<8x64xf32>
    %350 = math.tanh %349 : vector<8x64xf32>
    %351 = arith.mulf %346, %350 : vector<8x64xf32>
    %352 = vector.extract_strided_slice %2 {offsets = [0, 0], sizes = [8, 64], strides = [1, 1]} : vector<64x64xi1> to vector<8x64xi1>
    %353 = arith.select %352, %351, %321 : vector<8x64xi1>, vector<8x64xf32>
    %354 = arith.select %352, %349, %322 : vector<8x64xi1>, vector<8x64xf32>
    %355 = arith.select %320, %278, %276 : vector<8x256xi1>, vector<8x256xf32>
    %356 = arith.truncf %353 : vector<8x64xf32> to vector<8x64xbf16>
    %cst_67 = arith.constant dense<0.000000e+00> : vector<8x256xf32>
    %357 = tpu.matmul %356, %5, %cst_67 {dimension_numbers = #tpu.dot_dimension_numbers<[1], [0], [0], [1], [0, 0, 1, 1], [], []>} : vector<8x64xbf16>, vector<64x256xbf16>, vector<8x256xf32> -> vector<8x256xf32>
    %358 = arith.addf %355, %357 : vector<8x256xf32>
    %359 = vector.extract_strided_slice %358 {offsets = [0, 0], sizes = [8, 64], strides = [1, 1]} : vector<8x256xf32> to vector<8x64xf32>
    %360 = arith.negf %359 : vector<8x64xf32>
    %361 = math.exp %360 : vector<8x64xf32>
    %cst_68 = arith.constant 1.000000e+00 : f32
    %362 = vector.broadcast %cst_68 : f32 to vector<8x64xf32>
    %363 = arith.addf %362, %361 : vector<8x64xf32>
    %364 = arith.divf %362, %363 : vector<8x64xf32>
    %365 = vector.extract_strided_slice %358 {offsets = [0, 64], sizes = [8, 64], strides = [1, 1]} : vector<8x256xf32> to vector<8x64xf32>
    %366 = arith.negf %365 : vector<8x64xf32>
    %367 = math.exp %366 : vector<8x64xf32>
    %cst_69 = arith.constant 1.000000e+00 : f32
    %368 = vector.broadcast %cst_69 : f32 to vector<8x64xf32>
    %369 = arith.addf %368, %367 : vector<8x64xf32>
    %370 = arith.divf %368, %369 : vector<8x64xf32>
    %371 = vector.extract_strided_slice %358 {offsets = [0, 128], sizes = [8, 64], strides = [1, 1]} : vector<8x256xf32> to vector<8x64xf32>
    %372 = math.tanh %371 : vector<8x64xf32>
    %373 = vector.extract_strided_slice %358 {offsets = [0, 192], sizes = [8, 64], strides = [1, 1]} : vector<8x256xf32> to vector<8x64xf32>
    %374 = arith.negf %373 : vector<8x64xf32>
    %375 = math.exp %374 : vector<8x64xf32>
    %cst_70 = arith.constant 1.000000e+00 : f32
    %376 = vector.broadcast %cst_70 : f32 to vector<8x64xf32>
    %377 = arith.addf %376, %375 : vector<8x64xf32>
    %378 = arith.divf %376, %377 : vector<8x64xf32>
    %379 = arith.mulf %370, %354 : vector<8x64xf32>
    %380 = arith.mulf %364, %372 : vector<8x64xf32>
    %381 = arith.addf %379, %380 : vector<8x64xf32>
    %382 = math.tanh %381 : vector<8x64xf32>
    %383 = arith.mulf %378, %382 : vector<8x64xf32>
    %384 = vector.extract_strided_slice %2 {offsets = [8, 0], sizes = [8, 64], strides = [1, 1]} : vector<64x64xi1> to vector<8x64xi1>
    %385 = arith.select %384, %383, %353 : vector<8x64xi1>, vector<8x64xf32>
    %386 = arith.select %384, %381, %354 : vector<8x64xi1>, vector<8x64xf32>
    %387 = arith.select %320, %240, %238 : vector<8x256xi1>, vector<8x256xf32>
    %388 = arith.truncf %385 : vector<8x64xf32> to vector<8x64xbf16>
    %cst_71 = arith.constant dense<0.000000e+00> : vector<8x256xf32>
    %389 = tpu.matmul %388, %5, %cst_71 {dimension_numbers = #tpu.dot_dimension_numbers<[1], [0], [0], [1], [0, 0, 1, 1], [], []>} : vector<8x64xbf16>, vector<64x256xbf16>, vector<8x256xf32> -> vector<8x256xf32>
    %390 = arith.addf %387, %389 : vector<8x256xf32>
    %391 = vector.extract_strided_slice %390 {offsets = [0, 0], sizes = [8, 64], strides = [1, 1]} : vector<8x256xf32> to vector<8x64xf32>
    %392 = arith.negf %391 : vector<8x64xf32>
    %393 = math.exp %392 : vector<8x64xf32>
    %cst_72 = arith.constant 1.000000e+00 : f32
    %394 = vector.broadcast %cst_72 : f32 to vector<8x64xf32>
    %395 = arith.addf %394, %393 : vector<8x64xf32>
    %396 = arith.divf %394, %395 : vector<8x64xf32>
    %397 = vector.extract_strided_slice %390 {offsets = [0, 64], sizes = [8, 64], strides = [1, 1]} : vector<8x256xf32> to vector<8x64xf32>
    %398 = arith.negf %397 : vector<8x64xf32>
    %399 = math.exp %398 : vector<8x64xf32>
    %cst_73 = arith.constant 1.000000e+00 : f32
    %400 = vector.broadcast %cst_73 : f32 to vector<8x64xf32>
    %401 = arith.addf %400, %399 : vector<8x64xf32>
    %402 = arith.divf %400, %401 : vector<8x64xf32>
    %403 = vector.extract_strided_slice %390 {offsets = [0, 128], sizes = [8, 64], strides = [1, 1]} : vector<8x256xf32> to vector<8x64xf32>
    %404 = math.tanh %403 : vector<8x64xf32>
    %405 = vector.extract_strided_slice %390 {offsets = [0, 192], sizes = [8, 64], strides = [1, 1]} : vector<8x256xf32> to vector<8x64xf32>
    %406 = arith.negf %405 : vector<8x64xf32>
    %407 = math.exp %406 : vector<8x64xf32>
    %cst_74 = arith.constant 1.000000e+00 : f32
    %408 = vector.broadcast %cst_74 : f32 to vector<8x64xf32>
    %409 = arith.addf %408, %407 : vector<8x64xf32>
    %410 = arith.divf %408, %409 : vector<8x64xf32>
    %411 = arith.mulf %402, %386 : vector<8x64xf32>
    %412 = arith.mulf %396, %404 : vector<8x64xf32>
    %413 = arith.addf %411, %412 : vector<8x64xf32>
    %414 = math.tanh %413 : vector<8x64xf32>
    %415 = arith.mulf %410, %414 : vector<8x64xf32>
    %416 = vector.extract_strided_slice %2 {offsets = [16, 0], sizes = [8, 64], strides = [1, 1]} : vector<64x64xi1> to vector<8x64xi1>
    %417 = arith.select %416, %415, %385 : vector<8x64xi1>, vector<8x64xf32>
    %418 = arith.select %416, %413, %386 : vector<8x64xi1>, vector<8x64xf32>
    %419 = arith.select %320, %202, %200 : vector<8x256xi1>, vector<8x256xf32>
    %420 = arith.truncf %417 : vector<8x64xf32> to vector<8x64xbf16>
    %cst_75 = arith.constant dense<0.000000e+00> : vector<8x256xf32>
    %421 = tpu.matmul %420, %5, %cst_75 {dimension_numbers = #tpu.dot_dimension_numbers<[1], [0], [0], [1], [0, 0, 1, 1], [], []>} : vector<8x64xbf16>, vector<64x256xbf16>, vector<8x256xf32> -> vector<8x256xf32>
    %422 = arith.addf %419, %421 : vector<8x256xf32>
    %423 = vector.extract_strided_slice %422 {offsets = [0, 0], sizes = [8, 64], strides = [1, 1]} : vector<8x256xf32> to vector<8x64xf32>
    %424 = arith.negf %423 : vector<8x64xf32>
    %425 = math.exp %424 : vector<8x64xf32>
    %cst_76 = arith.constant 1.000000e+00 : f32
    %426 = vector.broadcast %cst_76 : f32 to vector<8x64xf32>
    %427 = arith.addf %426, %425 : vector<8x64xf32>
    %428 = arith.divf %426, %427 : vector<8x64xf32>
    %429 = vector.extract_strided_slice %422 {offsets = [0, 64], sizes = [8, 64], strides = [1, 1]} : vector<8x256xf32> to vector<8x64xf32>
    %430 = arith.negf %429 : vector<8x64xf32>
    %431 = math.exp %430 : vector<8x64xf32>
    %cst_77 = arith.constant 1.000000e+00 : f32
    %432 = vector.broadcast %cst_77 : f32 to vector<8x64xf32>
    %433 = arith.addf %432, %431 : vector<8x64xf32>
    %434 = arith.divf %432, %433 : vector<8x64xf32>
    %435 = vector.extract_strided_slice %422 {offsets = [0, 128], sizes = [8, 64], strides = [1, 1]} : vector<8x256xf32> to vector<8x64xf32>
    %436 = math.tanh %435 : vector<8x64xf32>
    %437 = vector.extract_strided_slice %422 {offsets = [0, 192], sizes = [8, 64], strides = [1, 1]} : vector<8x256xf32> to vector<8x64xf32>
    %438 = arith.negf %437 : vector<8x64xf32>
    %439 = math.exp %438 : vector<8x64xf32>
    %cst_78 = arith.constant 1.000000e+00 : f32
    %440 = vector.broadcast %cst_78 : f32 to vector<8x64xf32>
    %441 = arith.addf %440, %439 : vector<8x64xf32>
    %442 = arith.divf %440, %441 : vector<8x64xf32>
    %443 = arith.mulf %434, %418 : vector<8x64xf32>
    %444 = arith.mulf %428, %436 : vector<8x64xf32>
    %445 = arith.addf %443, %444 : vector<8x64xf32>
    %446 = math.tanh %445 : vector<8x64xf32>
    %447 = arith.mulf %442, %446 : vector<8x64xf32>
    %448 = vector.extract_strided_slice %2 {offsets = [24, 0], sizes = [8, 64], strides = [1, 1]} : vector<64x64xi1> to vector<8x64xi1>
    %449 = arith.select %448, %447, %417 : vector<8x64xi1>, vector<8x64xf32>
    %450 = arith.select %448, %445, %418 : vector<8x64xi1>, vector<8x64xf32>
    %451 = arith.select %320, %200, %202 : vector<8x256xi1>, vector<8x256xf32>
    %452 = arith.truncf %449 : vector<8x64xf32> to vector<8x64xbf16>
    %cst_79 = arith.constant dense<0.000000e+00> : vector<8x256xf32>
    %453 = tpu.matmul %452, %5, %cst_79 {dimension_numbers = #tpu.dot_dimension_numbers<[1], [0], [0], [1], [0, 0, 1, 1], [], []>} : vector<8x64xbf16>, vector<64x256xbf16>, vector<8x256xf32> -> vector<8x256xf32>
    %454 = arith.addf %451, %453 : vector<8x256xf32>
    %455 = vector.extract_strided_slice %454 {offsets = [0, 0], sizes = [8, 64], strides = [1, 1]} : vector<8x256xf32> to vector<8x64xf32>
    %456 = arith.negf %455 : vector<8x64xf32>
    %457 = math.exp %456 : vector<8x64xf32>
    %cst_80 = arith.constant 1.000000e+00 : f32
    %458 = vector.broadcast %cst_80 : f32 to vector<8x64xf32>
    %459 = arith.addf %458, %457 : vector<8x64xf32>
    %460 = arith.divf %458, %459 : vector<8x64xf32>
    %461 = vector.extract_strided_slice %454 {offsets = [0, 64], sizes = [8, 64], strides = [1, 1]} : vector<8x256xf32> to vector<8x64xf32>
    %462 = arith.negf %461 : vector<8x64xf32>
    %463 = math.exp %462 : vector<8x64xf32>
    %cst_81 = arith.constant 1.000000e+00 : f32
    %464 = vector.broadcast %cst_81 : f32 to vector<8x64xf32>
    %465 = arith.addf %464, %463 : vector<8x64xf32>
    %466 = arith.divf %464, %465 : vector<8x64xf32>
    %467 = vector.extract_strided_slice %454 {offsets = [0, 128], sizes = [8, 64], strides = [1, 1]} : vector<8x256xf32> to vector<8x64xf32>
    %468 = math.tanh %467 : vector<8x64xf32>
    %469 = vector.extract_strided_slice %454 {offsets = [0, 192], sizes = [8, 64], strides = [1, 1]} : vector<8x256xf32> to vector<8x64xf32>
    %470 = arith.negf %469 : vector<8x64xf32>
    %471 = math.exp %470 : vector<8x64xf32>
    %cst_82 = arith.constant 1.000000e+00 : f32
    %472 = vector.broadcast %cst_82 : f32 to vector<8x64xf32>
    %473 = arith.addf %472, %471 : vector<8x64xf32>
    %474 = arith.divf %472, %473 : vector<8x64xf32>
    %475 = arith.mulf %466, %450 : vector<8x64xf32>
    %476 = arith.mulf %460, %468 : vector<8x64xf32>
    %477 = arith.addf %475, %476 : vector<8x64xf32>
    %478 = math.tanh %477 : vector<8x64xf32>
    %479 = arith.mulf %474, %478 : vector<8x64xf32>
    %480 = vector.extract_strided_slice %2 {offsets = [32, 0], sizes = [8, 64], strides = [1, 1]} : vector<64x64xi1> to vector<8x64xi1>
    %481 = arith.select %480, %479, %449 : vector<8x64xi1>, vector<8x64xf32>
    %482 = arith.select %480, %477, %450 : vector<8x64xi1>, vector<8x64xf32>
    %483 = arith.select %320, %238, %240 : vector<8x256xi1>, vector<8x256xf32>
    %484 = arith.truncf %481 : vector<8x64xf32> to vector<8x64xbf16>
    %cst_83 = arith.constant dense<0.000000e+00> : vector<8x256xf32>
    %485 = tpu.matmul %484, %5, %cst_83 {dimension_numbers = #tpu.dot_dimension_numbers<[1], [0], [0], [1], [0, 0, 1, 1], [], []>} : vector<8x64xbf16>, vector<64x256xbf16>, vector<8x256xf32> -> vector<8x256xf32>
    %486 = arith.addf %483, %485 : vector<8x256xf32>
    %487 = vector.extract_strided_slice %486 {offsets = [0, 0], sizes = [8, 64], strides = [1, 1]} : vector<8x256xf32> to vector<8x64xf32>
    %488 = arith.negf %487 : vector<8x64xf32>
    %489 = math.exp %488 : vector<8x64xf32>
    %cst_84 = arith.constant 1.000000e+00 : f32
    %490 = vector.broadcast %cst_84 : f32 to vector<8x64xf32>
    %491 = arith.addf %490, %489 : vector<8x64xf32>
    %492 = arith.divf %490, %491 : vector<8x64xf32>
    %493 = vector.extract_strided_slice %486 {offsets = [0, 64], sizes = [8, 64], strides = [1, 1]} : vector<8x256xf32> to vector<8x64xf32>
    %494 = arith.negf %493 : vector<8x64xf32>
    %495 = math.exp %494 : vector<8x64xf32>
    %cst_85 = arith.constant 1.000000e+00 : f32
    %496 = vector.broadcast %cst_85 : f32 to vector<8x64xf32>
    %497 = arith.addf %496, %495 : vector<8x64xf32>
    %498 = arith.divf %496, %497 : vector<8x64xf32>
    %499 = vector.extract_strided_slice %486 {offsets = [0, 128], sizes = [8, 64], strides = [1, 1]} : vector<8x256xf32> to vector<8x64xf32>
    %500 = math.tanh %499 : vector<8x64xf32>
    %501 = vector.extract_strided_slice %486 {offsets = [0, 192], sizes = [8, 64], strides = [1, 1]} : vector<8x256xf32> to vector<8x64xf32>
    %502 = arith.negf %501 : vector<8x64xf32>
    %503 = math.exp %502 : vector<8x64xf32>
    %cst_86 = arith.constant 1.000000e+00 : f32
    %504 = vector.broadcast %cst_86 : f32 to vector<8x64xf32>
    %505 = arith.addf %504, %503 : vector<8x64xf32>
    %506 = arith.divf %504, %505 : vector<8x64xf32>
    %507 = arith.mulf %498, %482 : vector<8x64xf32>
    %508 = arith.mulf %492, %500 : vector<8x64xf32>
    %509 = arith.addf %507, %508 : vector<8x64xf32>
    %510 = math.tanh %509 : vector<8x64xf32>
    %511 = arith.mulf %506, %510 : vector<8x64xf32>
    %512 = vector.extract_strided_slice %2 {offsets = [40, 0], sizes = [8, 64], strides = [1, 1]} : vector<64x64xi1> to vector<8x64xi1>
    %513 = arith.select %512, %511, %481 : vector<8x64xi1>, vector<8x64xf32>
    %514 = arith.select %512, %509, %482 : vector<8x64xi1>, vector<8x64xf32>
    %515 = arith.select %320, %276, %278 : vector<8x256xi1>, vector<8x256xf32>
    %516 = arith.truncf %513 : vector<8x64xf32> to vector<8x64xbf16>
    %cst_87 = arith.constant dense<0.000000e+00> : vector<8x256xf32>
    %517 = tpu.matmul %516, %5, %cst_87 {dimension_numbers = #tpu.dot_dimension_numbers<[1], [0], [0], [1], [0, 0, 1, 1], [], []>} : vector<8x64xbf16>, vector<64x256xbf16>, vector<8x256xf32> -> vector<8x256xf32>
    %518 = arith.addf %515, %517 : vector<8x256xf32>
    %519 = vector.extract_strided_slice %518 {offsets = [0, 0], sizes = [8, 64], strides = [1, 1]} : vector<8x256xf32> to vector<8x64xf32>
    %520 = arith.negf %519 : vector<8x64xf32>
    %521 = math.exp %520 : vector<8x64xf32>
    %cst_88 = arith.constant 1.000000e+00 : f32
    %522 = vector.broadcast %cst_88 : f32 to vector<8x64xf32>
    %523 = arith.addf %522, %521 : vector<8x64xf32>
    %524 = arith.divf %522, %523 : vector<8x64xf32>
    %525 = vector.extract_strided_slice %518 {offsets = [0, 64], sizes = [8, 64], strides = [1, 1]} : vector<8x256xf32> to vector<8x64xf32>
    %526 = arith.negf %525 : vector<8x64xf32>
    %527 = math.exp %526 : vector<8x64xf32>
    %cst_89 = arith.constant 1.000000e+00 : f32
    %528 = vector.broadcast %cst_89 : f32 to vector<8x64xf32>
    %529 = arith.addf %528, %527 : vector<8x64xf32>
    %530 = arith.divf %528, %529 : vector<8x64xf32>
    %531 = vector.extract_strided_slice %518 {offsets = [0, 128], sizes = [8, 64], strides = [1, 1]} : vector<8x256xf32> to vector<8x64xf32>
    %532 = math.tanh %531 : vector<8x64xf32>
    %533 = vector.extract_strided_slice %518 {offsets = [0, 192], sizes = [8, 64], strides = [1, 1]} : vector<8x256xf32> to vector<8x64xf32>
    %534 = arith.negf %533 : vector<8x64xf32>
    %535 = math.exp %534 : vector<8x64xf32>
    %cst_90 = arith.constant 1.000000e+00 : f32
    %536 = vector.broadcast %cst_90 : f32 to vector<8x64xf32>
    %537 = arith.addf %536, %535 : vector<8x64xf32>
    %538 = arith.divf %536, %537 : vector<8x64xf32>
    %539 = arith.mulf %530, %514 : vector<8x64xf32>
    %540 = arith.mulf %524, %532 : vector<8x64xf32>
    %541 = arith.addf %539, %540 : vector<8x64xf32>
    %542 = math.tanh %541 : vector<8x64xf32>
    %543 = arith.mulf %538, %542 : vector<8x64xf32>
    %544 = vector.extract_strided_slice %2 {offsets = [48, 0], sizes = [8, 64], strides = [1, 1]} : vector<64x64xi1> to vector<8x64xi1>
    %545 = arith.select %544, %543, %513 : vector<8x64xi1>, vector<8x64xf32>
    %546 = arith.select %544, %541, %514 : vector<8x64xi1>, vector<8x64xf32>
    %547 = arith.select %320, %313, %315 : vector<8x256xi1>, vector<8x256xf32>
    %548 = arith.truncf %545 : vector<8x64xf32> to vector<8x64xbf16>
    %cst_91 = arith.constant dense<0.000000e+00> : vector<8x256xf32>
    %549 = tpu.matmul %548, %5, %cst_91 {dimension_numbers = #tpu.dot_dimension_numbers<[1], [0], [0], [1], [0, 0, 1, 1], [], []>} : vector<8x64xbf16>, vector<64x256xbf16>, vector<8x256xf32> -> vector<8x256xf32>
    %550 = arith.addf %547, %549 : vector<8x256xf32>
    %551 = vector.extract_strided_slice %550 {offsets = [0, 0], sizes = [8, 64], strides = [1, 1]} : vector<8x256xf32> to vector<8x64xf32>
    %552 = arith.negf %551 : vector<8x64xf32>
    %553 = math.exp %552 : vector<8x64xf32>
    %cst_92 = arith.constant 1.000000e+00 : f32
    %554 = vector.broadcast %cst_92 : f32 to vector<8x64xf32>
    %555 = arith.addf %554, %553 : vector<8x64xf32>
    %556 = arith.divf %554, %555 : vector<8x64xf32>
    %557 = vector.extract_strided_slice %550 {offsets = [0, 64], sizes = [8, 64], strides = [1, 1]} : vector<8x256xf32> to vector<8x64xf32>
    %558 = arith.negf %557 : vector<8x64xf32>
    %559 = math.exp %558 : vector<8x64xf32>
    %cst_93 = arith.constant 1.000000e+00 : f32
    %560 = vector.broadcast %cst_93 : f32 to vector<8x64xf32>
    %561 = arith.addf %560, %559 : vector<8x64xf32>
    %562 = arith.divf %560, %561 : vector<8x64xf32>
    %563 = vector.extract_strided_slice %550 {offsets = [0, 128], sizes = [8, 64], strides = [1, 1]} : vector<8x256xf32> to vector<8x64xf32>
    %564 = math.tanh %563 : vector<8x64xf32>
    %565 = vector.extract_strided_slice %550 {offsets = [0, 192], sizes = [8, 64], strides = [1, 1]} : vector<8x256xf32> to vector<8x64xf32>
    %566 = arith.negf %565 : vector<8x64xf32>
    %567 = math.exp %566 : vector<8x64xf32>
    %cst_94 = arith.constant 1.000000e+00 : f32
    %568 = vector.broadcast %cst_94 : f32 to vector<8x64xf32>
    %569 = arith.addf %568, %567 : vector<8x64xf32>
    %570 = arith.divf %568, %569 : vector<8x64xf32>
    %571 = arith.mulf %562, %546 : vector<8x64xf32>
    %572 = arith.mulf %556, %564 : vector<8x64xf32>
    %573 = arith.addf %571, %572 : vector<8x64xf32>
    %574 = math.tanh %573 : vector<8x64xf32>
    %575 = arith.mulf %570, %574 : vector<8x64xf32>
    %576 = vector.extract_strided_slice %2 {offsets = [56, 0], sizes = [8, 64], strides = [1, 1]} : vector<64x64xi1> to vector<8x64xi1>
    %577 = arith.select %576, %575, %545 : vector<8x64xi1>, vector<8x64xf32>
    %578 = arith.truncf %577 : vector<8x64xf32> to vector<8x64xbf16>
    %cst_95 = arith.constant dense<0.000000e+00> : vector<8x128xf32>
    %579 = tpu.matmul %578, %6, %cst_95 {dimension_numbers = #tpu.dot_dimension_numbers<[1], [0], [0], [1], [0, 0, 1, 1], [], []>} : vector<8x64xbf16>, vector<64x128xbf16>, vector<8x128xf32> -> vector<8x128xf32>
    %580 = vector.broadcast %8 : vector<1x128xf32> to vector<8x128xf32>
    %581 = arith.addf %579, %580 : vector<8x128xf32>
    %cst_96 = arith.constant 0.000000e+00 : f32
    %582 = vector.broadcast %cst_96 : f32 to vector<8x128xf32>
    %583 = arith.maximumf %581, %582 : vector<8x128xf32>
    %c0_97 = arith.constant 0 : index
    %c0_98 = arith.constant 0 : index
    %584 = vector.load %arg4[%c0_97, %c0_98] : memref<8x128xf32, #tpu.memory_space<vmem>>, vector<8x128xf32>
    tpu.vector_store %arg4[%c0_97, %c0_98], %583 {strides = array<i32>} : memref<8x128xf32, #tpu.memory_space<vmem>>, vector<8x128xf32>,
    return
  }
}

</mosaic_0001>

<bundles_post_ra>
// kernel: sequence_encoder_forward.1
= control target key start
LH: loop header
LB: loop body
LE: loop exit
PB: predicated region body
PF: predicated region fallthrough
CT: control target
= control target key end

     0   :  { %v2800_v1 = vmov 0   ;;  %s2801_s9 = smov 64   ;;  %vm127_vm1 = vcmask 523264   ;;  %vm2803_vm11 = vmmov 0   ;;  %s3864_s2 = inlined_call_operand.vmem [shape: bf16[192,512], index: 2, kind: input, shape index: {}]   ;;  %s3865_s0 = inlined_call_operand.vmem [shape: f32[64,256], index: 0, kind: input, shape index: {}]   ;;  %s3866_s1 = inlined_call_operand.vmem [shape: f32[64,64], index: 1, kind: input, shape index: {}]   ;;  %s3867_s3 = inlined_call_operand.vmem [shape: f32[1,512], index: 3, kind: input, shape index: {}]   ;;  %s3868_s4 = inlined_call_operand.vmem [shape: f32[8,128], index: 4, kind: output, shape index: {}]  }
   0x1   :  { %v2832_v0 = vld [vmem:[%s3864_s2 + $0x84] ss:$16 sps:$4 sm:$0xff]   ;;  %163 = vmatprep.mubr.bf16.mxu0 %v2800_v1  ;;  %324 = vmatprep.mubr.bf16.mxu1 %v2800_v1  ;;  %v2839_v2 = vld [vmem:[%s3864_s2 + $0x80] ss:$16 sps:$4 sm:$0xff]   ;;  %v173_v16 = vld [vmem:[%s3865_s0 + $0x8] sm:$0xff] }
   0x2   :  { %131 = vmatprep.subr.bf16.mxu0 %v2832_v0  ;;  %v2845_v3 = vld [vmem:[%s3864_s2 + $0xa4] ss:$16 sps:$4 sm:$0xff]   ;;  %v2851_v4 = vld [vmem:[%s3864_s2 + $0xa0] ss:$16 sps:$4 sm:$0xff]   ;;  %v2902_v26 = vld [vmem:[%s3864_s2 + $0xc] ss:$16 sps:$4 sm:$0xff]  }
   0x3   :  { %132 = vmatpush1.bf16.msra.mxu0 %v2839_v2  ;;  %v2857_v5 = vld [vmem:[%s3864_s2 + $0xc4] ss:$16 sps:$4 sm:$0xff]   ;;  %v2862_v6 = vld [vmem:[%s3864_s2 + $0xc0] ss:$16 sps:$4 sm:$0xff]   ;;  %v2907_v27 = vld [vmem:[%s3864_s2 + $0x8] ss:$16 sps:$4 sm:$0xff]  }
   0x4   :  { %133 = vmatprep.subr.bf16.mxu0 %v2845_v3  ;;  %v2867_v7 = vld [vmem:[%s3864_s2 + $0xe4] ss:$16 sps:$4 sm:$0xff]   ;;  %v2874_v8 = vld [vmem:[%s3864_s2 + $0xe0] ss:$16 sps:$4 sm:$0xff]   ;;  %v2925_v30 = vld [vmem:[%s3864_s2 + $0x2c] ss:$16 sps:$4 sm:$0xff]  }
   0x5   :  { %v172_v9 = vld [vmem:[%s3865_s0] sm:$0xff]  ;;  %v2930_v31 = vld [vmem:[%s3864_s2 + $0x28] ss:$16 sps:$4 sm:$0xff]   ;;  %v2942_v33 = vld [vmem:[%s3864_s2 + $0x4c] ss:$16 sps:$4 sm:$0xff]  }
   0x6   :  { %v2891_v23 = vld [vmem:[%s3864_s2 + $0x4] ss:$16 sps:$4 sm:$0xff]   ;;  %v2897_v25 = vld [vmem:[%s3864_s2] ss:$16 sps:$4 sm:$0xff]   ;;  %v2955_v36 = vld [vmem:[%s3864_s2 + $0x48] ss:$16 sps:$4 sm:$0xff]  }
   0x7   :  { %134 = vmatpush1.bf16.msra.mxu0 %v2851_v4  ;;  %292 = vmatprep.subr.bf16.mxu1 %v2891_v23  ;;  %v2915_v28 = vld [vmem:[%s3864_s2 + $0x24] ss:$16 sps:$4 sm:$0xff]   ;;  %v2920_v29 = vld [vmem:[%s3864_s2 + $0x20] ss:$16 sps:$4 sm:$0xff]   ;;  %v2966_v38 = vld [vmem:[%s3864_s2 + $0x6c] ss:$16 sps:$4 sm:$0xff]  }
   0x8   :  { %135 = vmatprep.subr.bf16.mxu0 %v2857_v5  ;;  %293 = vmatpush1.bf16.msra.mxu1 %v2897_v25  ;;  %v2935_v32 = vld [vmem:[%s3864_s2 + $0x44] ss:$16 sps:$4 sm:$0xff]   ;;  %v2948_v34 = vld [vmem:[%s3864_s2 + $0x40] ss:$16 sps:$4 sm:$0xff]   ;;  %v2980_v44 = vld [vmem:[%s3864_s2 + $0x68] ss:$16 sps:$4 sm:$0xff]  }
   0x9   :  { %294 = vmatprep.subr.bf16.mxu1 %v2915_v28  ;;  %v2960_v37 = vld [vmem:[%s3864_s2 + $0x64] ss:$16 sps:$4 sm:$0xff]   ;;  %v2972_v40 = vld [vmem:[%s3864_s2 + $0x60] ss:$16 sps:$4 sm:$0xff]   ;;  %v420_v61 = vld [vmem:[%s3865_s0 + $0x18] sm:$0xff] }
   0xa   :  { %v2991_v48 = vld [vmem:[%s3866_s1] sm:$0xff]  ;;  %v419_v54 = vld [vmem:[%s3865_s0 + $0x10] sm:$0xff] }
   0xb   :  { %136 = vmatpush1.bf16.msra.mxu0 %v2862_v6  ;;  %vm26_vm0 = vcmp.ne.f32.partialorder %v2991_v48, 0.0 }
   0xc   :  { %137 = vmatprep.subr.bf16.mxu0 %v2867_v7  ;;  %295 = vmatpush1.bf16.msra.mxu1 %v2920_v29 }
   0xd   :  { %296 = vmatprep.subr.bf16.mxu1 %v2935_v32 }
   0xf   :  { %138 = vmatpush1.bf16.msra.mxu0 %v2874_v8 }
  0x10   :  { %333 = vmatprep.subr.bf16.mxu0 %v2902_v26  ;;  %297 = vmatpush1.bf16.msra.mxu1 %v2948_v34 }
  0x11   :  { %298 = vmatprep.subr.bf16.mxu1 %v2960_v37 }
  0x12   :  { %164 = vmatmul.mubr.bf16.vlgmr.msra.gmra.mrb[0].mxu0 %v2800_v1 }
  0x13   :  { %365 = vmatprep.mubr.bf16.mxu0 %v2800_v1  ;;  %334 = vmatpush1.bf16.msra.mxu0 %v2907_v27 }
  0x14   :  { %335 = vmatprep.subr.bf16.mxu0 %v2925_v30  ;;  %299 = vmatpush1.bf16.msra.mxu1 %v2972_v40 }
  0x15   :  { %378 = vmatprep.subr.bf16.mxu1 %v2832_v0 }
  0x17   :  { %336 = vmatpush1.bf16.msra.mxu0 %v2930_v31 }
  0x18   :  { %337 = vmatprep.subr.bf16.mxu0 %v2942_v33 }
  0x1b   :  { %338 = vmatpush1.bf16.msra.mxu0 %v2955_v36 }
  0x1c   :  { %339 = vmatprep.subr.bf16.mxu0 %v2966_v38 }
  0x1f   :  { %340 = vmatpush1.bf16.msra.mxu0 %v2980_v44 }
  0x20   :  { %463 = vmatprep.subr.bf16.mxu0 %v2891_v23 }
  0xe5   :  { %v165_v10 = vpop.f32.mrb[0].mxu0 }
  0xe6   :  { %v174_v11 = vadd.f32 %v172_v9, %v165_v10  ;;  %v167_v12 = vpop.f32.mrb[1].mxu0 }
  0xe7   :  { %v169_v13 = vpop.f32.mrb[2].mxu0  ;;  %v175_v17 = vadd.f32 %v173_v16, %v167_v12 }
  0xe8   :  { %v2372_v14 = vmul.f32 -1.442695, %v174_v11  ;;  %v170_v15 = vpop.f32.mrb[3].mxu0 }
  0xe9   :  { %v2373_v24 = vmul.f32 -1.442695, %v175_v17 }
  0xea   :  { %2585 = vpow2.f32 %v2372_v14 }
  0xeb   :  { %2587 = vtanh.f32 %v175_v17 }
  0xf4   :  { %v2586_v18 = vpop.eup %2585 }
  0xf5   :  { %v179_v19 = vadd.f32 1.0, %v2586_v18  ;;  %v2588_v20 = vpop.eup %2587 }
  0xf7   :  { %2589 = vrcp.f32 %v179_v19 }
  0xf8   :  { %2591 = vpow2.f32 %v2373_v24  ;;  %v3048_v24 = vld [vmem:[%s3866_s1 + $0x8] sm:$0xff] }
  0xf9   :  { %vm27_vm2 = vcmp.ne.f32.partialorder %v3048_v24, 0.0 }
 0x101   :  { %v2590_v21 = vpop.eup %2589 }
 0x102   :  { %v190_v22 = vmul.f32 %v2590_v21, %v2588_v20  ;;  %v2592_v35 = vpop.eup %2591  ;;  %v189_v41 = vmul.f32 0.0, %v2590_v21 }
 0x103   :  { %v186_v39 = vadd.f32 1.0, %v2592_v35 }
 0x104   :  { %192 = vrot.lane.b32.xlu0 %v190_v22, %s2801_s9 }
 0x105   :  { %2593 = vrcp.f32 %v186_v39 }
 0x10f   :  { %v2594_v45 = vpop.eup %2593 }
 0x176   :  { %v193_v42 = vpop.permute.xlu0 %192 }
 0x177   :  { %v195_v43 = vadd.f32 %v193_v42, %v189_v41 }
 0x179   :  { %2595 = vtanh.f32 %v195_v43  ;;  %204 = vrot.lane.b32.xlu1 %v195_v43, %s2801_s9 }
 0x183   :  { %v2596_v46 = vpop.eup %2595 }
 0x184   :  { %v197_v47 = vmul.f32 %v2596_v46, %v2594_v45  ;;  %v590_v45 = vld [vmem:[%s3865_s0 + $0x20] sm:$0xff] }
 0x186   :  { %199 = vrot.lane.b32.xlu0 %v197_v47, %s2801_s9 }
 0x1eb   :  { %v205_v49 = vpop.permute.xlu1 %204 }
 0x1ec   :  { %v2996_v50 = vsel %vm26_vm0, %v205_v49, 0.0 }
 0x1ed   :  { %437 = vrot.lane.b32.xlu1 %v2996_v50, %s2801_s9 }
 0x1f8   :  { %v200_v51 = vpop.permute.xlu0 %199 }
 0x1f9   :  { %v3002_v52 = vsel %vm26_vm0, %v200_v51, 0.0 }
 0x1fa   :  { %v208_v53 = vpack.c.bf16 %v3002_v52, %v3002_v52 }
 0x1fc   :  { %2390 = vmatmul.mubr.msk.bf16.vlgmr.msra.gmra.mrb[0].mxu1 %vm127_vm1, %v208_v53  ;;  %2391 = vmatmul.mubr.msk.bf16.vlgmr.msra.gmra.mrb[4].mxu0 %vm127_vm1, %v208_v53 }
 0x1fd   :  { %379 = vmatpush1.bf16.msra.mxu1 %v2839_v2  ;;  %410 = vmatprep.mubr.bf16.mxu1 %v2800_v1 }
 0x1fe   :  { %380 = vmatprep.subr.bf16.mxu1 %v2845_v3  ;;  %464 = vmatpush1.bf16.msra.mxu0 %v2897_v25 }
 0x1ff   :  { %465 = vmatprep.subr.bf16.mxu0 %v2915_v28  ;;  %495 = vmatprep.mubr.bf16.mxu0 %v2800_v1 }
 0x201   :  { %381 = vmatpush1.bf16.msra.mxu1 %v2851_v4 }
 0x202   :  { %382 = vmatprep.subr.bf16.mxu1 %v2857_v5  ;;  %466 = vmatpush1.bf16.msra.mxu0 %v2920_v29 }
 0x203   :  { %467 = vmatprep.subr.bf16.mxu0 %v2935_v32 }
 0x205   :  { %383 = vmatpush1.bf16.msra.mxu1 %v2862_v6 }
 0x206   :  { %384 = vmatprep.subr.bf16.mxu1 %v2867_v7  ;;  %468 = vmatpush1.bf16.msra.mxu0 %v2948_v34 }
 0x207   :  { %469 = vmatprep.subr.bf16.mxu0 %v2960_v37 }
 0x209   :  { %385 = vmatpush1.bf16.msra.mxu1 %v2874_v8 }
 0x20a   :  { %504 = vmatprep.subr.bf16.mxu1 %v2902_v26  ;;  %470 = vmatpush1.bf16.msra.mxu0 %v2972_v40 }
 0x20b   :  { %549 = vmatprep.subr.bf16.mxu0 %v2832_v0 }
 0x20c   :  { %2392 = vmatmul.mubr.msk.bf16.vlgmr.msra.gmra.mrb[4].mxu1 %vm127_vm1, %v208_v53  ;;  %v591_v53 = vld [vmem:[%s3865_s0 + $0x28] sm:$0xff] }
 0x20d   :  { %505 = vmatpush1.bf16.msra.mxu1 %v2907_v27  ;;  %536 = vmatprep.mubr.bf16.mxu1 %v2800_v1 }
 0x20e   :  { %506 = vmatprep.subr.bf16.mxu1 %v2925_v30 }
 0x211   :  { %507 = vmatpush1.bf16.msra.mxu1 %v2930_v31 }
 0x212   :  { %508 = vmatprep.subr.bf16.mxu1 %v2942_v33 }
 0x215   :  { %509 = vmatpush1.bf16.msra.mxu1 %v2955_v36 }
 0x216   :  { %510 = vmatprep.subr.bf16.mxu1 %v2966_v38 }
 0x219   :  { %511 = vmatpush1.bf16.msra.mxu1 %v2980_v44 }
 0x21a   :  { %634 = vmatprep.subr.bf16.mxu1 %v2891_v23 }
 0x25f   :  { %v438_v15 = vpop.permute.xlu1 %437 }
 0x2df   :  { %v412_v55 = vpop.f32.mrb[4].mxu1 }
 0x2e0   :  { %v421_v56 = vadd.f32 %v419_v54, %v412_v55  ;;  %v414_v57 = vpop.f32.mrb[5].mxu1 }
 0x2e1   :  { %v416_v58 = vpop.f32.mrb[6].mxu1  ;;  %v422_v62 = vadd.f32 %v420_v61, %v414_v57 }
 0x2e2   :  { %v2393_v59 = vmul.f32 -1.442695, %v421_v56  ;;  %v417_v60 = vpop.f32.mrb[7].mxu1 }
 0x2e3   :  { %v2394_v13 = vmul.f32 -1.442695, %v422_v62 }
 0x2e4   :  { %2597 = vpow2.f32 %v2393_v59 }
 0x2e5   :  { %2599 = vtanh.f32 %v422_v62 }
 0x2ee   :  { %v2598_v63 = vpop.eup %2597 }
 0x2ef   :  { %v426_v9 = vadd.f32 1.0, %v2598_v63  ;;  %v2600_v10 = vpop.eup %2599 }
 0x2f1   :  { %2601 = vrcp.f32 %v426_v9 }
 0x2f2   :  { %2603 = vpow2.f32 %v2394_v13 }
 0x2fb   :  { %v2602_v11 = vpop.eup %2601 }
 0x2fc   :  { %v441_v12 = vmul.f32 %v2602_v11, %v2600_v10  ;;  %v2604_v14 = vpop.eup %2603  ;;  %v440_v17 = vmul.f32 %v2602_v11, %v438_v15  ;;  %v3107_v15 = vld [vmem:[%s3866_s1 + $0x10] sm:$0xff] }
 0x2fd   :  { %v433_v16 = vadd.f32 1.0, %v2604_v14  ;;  %vm28_vm3 = vcmp.ne.f32.partialorder %v3107_v15, 0.0 }
 0x2fe   :  { %443 = vrot.lane.b32.xlu0 %v441_v12, %s2801_s9 }
 0x2ff   :  { %2605 = vrcp.f32 %v433_v16 }
 0x309   :  { %v2606_v20 = vpop.eup %2605 }
 0x370   :  { %v444_v18 = vpop.permute.xlu0 %443 }
 0x371   :  { %v446_v19 = vadd.f32 %v444_v18, %v440_v17 }
 0x373   :  { %2607 = vtanh.f32 %v446_v19  ;;  %455 = vrot.lane.b32.xlu0 %v446_v19, %s2801_s9 }
 0x37d   :  { %v2608_v21 = vpop.eup %2607 }
 0x37e   :  { %v448_v22 = vmul.f32 %v2608_v21, %v2606_v20  ;;  %v761_v21 = vld [vmem:[%s3865_s0 + $0x30] sm:$0xff] }
 0x380   :  { %450 = vrot.lane.b32.xlu1 %v448_v22, %s2801_s9 }
 0x3e5   :  { %v456_v35 = vpop.permute.xlu0 %455 }
 0x3e6   :  { %v3054_v39 = vsel %vm27_vm2, %v456_v35, %v2996_v50 }
 0x3e7   :  { %608 = vrot.lane.b32.xlu1 %v3054_v39, %s2801_s9 }
 0x3f2   :  { %v451_v41 = vpop.permute.xlu1 %450 }
 0x3f3   :  { %v3061_v42 = vsel %vm27_vm2, %v451_v41, %v3002_v52 }
 0x3f4   :  { %v459_v43 = vpack.c.bf16 %v3061_v42, %v3061_v42 }
 0x3f6   :  { %2395 = vmatmul.mubr.msk.bf16.vlgmr.msra.gmra.mrb[8].mxu0 %vm127_vm1, %v459_v43  ;;  %2396 = vmatmul.mubr.msk.bf16.vlgmr.msra.gmra.mrb[8].mxu1 %vm127_vm1, %v459_v43 }
 0x3f7   :  { %550 = vmatpush1.bf16.msra.mxu0 %v2839_v2  ;;  %581 = vmatprep.mubr.bf16.mxu0 %v2800_v1 }
 0x3f8   :  { %551 = vmatprep.subr.bf16.mxu0 %v2845_v3  ;;  %635 = vmatpush1.bf16.msra.mxu1 %v2897_v25 }
 0x3f9   :  { %636 = vmatprep.subr.bf16.mxu1 %v2915_v28  ;;  %666 = vmatprep.mubr.bf16.mxu1 %v2800_v1 }
 0x3fb   :  { %552 = vmatpush1.bf16.msra.mxu0 %v2851_v4 }
 0x3fc   :  { %553 = vmatprep.subr.bf16.mxu0 %v2857_v5  ;;  %637 = vmatpush1.bf16.msra.mxu1 %v2920_v29 }
 0x3fd   :  { %638 = vmatprep.subr.bf16.mxu1 %v2935_v32 }
 0x3ff   :  { %554 = vmatpush1.bf16.msra.mxu0 %v2862_v6 }
 0x400   :  { %555 = vmatprep.subr.bf16.mxu0 %v2867_v7  ;;  %639 = vmatpush1.bf16.msra.mxu1 %v2948_v34 }
 0x401   :  { %640 = vmatprep.subr.bf16.mxu1 %v2960_v37 }
 0x403   :  { %556 = vmatpush1.bf16.msra.mxu0 %v2874_v8 }
 0x404   :  { %675 = vmatprep.subr.bf16.mxu0 %v2902_v26  ;;  %641 = vmatpush1.bf16.msra.mxu1 %v2972_v40 }
 0x405   :  { %720 = vmatprep.subr.bf16.mxu1 %v2832_v0 }
 0x406   :  { %2397 = vmatmul.mubr.msk.bf16.vlgmr.msra.gmra.mrb[12].mxu0 %vm127_vm1, %v459_v43 }
 0x407   :  { %676 = vmatpush1.bf16.msra.mxu0 %v2907_v27  ;;  %707 = vmatprep.mubr.bf16.mxu0 %v2800_v1 }
 0x408   :  { %677 = vmatprep.subr.bf16.mxu0 %v2925_v30 }
 0x40b   :  { %678 = vmatpush1.bf16.msra.mxu0 %v2930_v31 }
 0x40c   :  { %679 = vmatprep.subr.bf16.mxu0 %v2942_v33 }
 0x40f   :  { %680 = vmatpush1.bf16.msra.mxu0 %v2955_v36 }
 0x410   :  { %681 = vmatprep.subr.bf16.mxu0 %v2966_v38 }
 0x413   :  { %682 = vmatpush1.bf16.msra.mxu0 %v2980_v44 }
 0x414   :  { %805 = vmatprep.subr.bf16.mxu0 %v2891_v23 }
 0x459   :  { %v609_v62 = vpop.permute.xlu1 %608 }
 0x4d9   :  { %v583_v46 = vpop.f32.mrb[12].mxu0 }
 0x4da   :  { %v592_v47 = vadd.f32 %v590_v45, %v583_v46  ;;  %v585_v49 = vpop.f32.mrb[13].mxu0  ;;  %v762_v45 = vld [vmem:[%s3865_s0 + $0x38] sm:$0xff] }
 0x4db   :  { %v587_v50 = vpop.f32.mrb[14].mxu0  ;;  %v593_v54 = vadd.f32 %v591_v53, %v585_v49 }
 0x4dc   :  { %v2398_v51 = vmul.f32 -1.442695, %v592_v47  ;;  %v588_v52 = vpop.f32.mrb[15].mxu0 }
 0x4dd   :  { %v2399_v60 = vmul.f32 -1.442695, %v593_v54 }
 0x4de   :  { %2609 = vpow2.f32 %v2398_v51 }
 0x4df   :  { %2611 = vtanh.f32 %v593_v54 }
 0x4e8   :  { %v2610_v55 = vpop.eup %2609 }
 0x4e9   :  { %v597_v56 = vadd.f32 1.0, %v2610_v55  ;;  %v2612_v57 = vpop.eup %2611 }
 0x4eb   :  { %2613 = vrcp.f32 %v597_v56 }
 0x4ec   :  { %2615 = vpow2.f32 %v2399_v60 }
 0x4f5   :  { %v2614_v58 = vpop.eup %2613 }
 0x4f6   :  { %v612_v59 = vmul.f32 %v2614_v58, %v2612_v57  ;;  %v2616_v61 = vpop.eup %2615  ;;  %v611_v9 = vmul.f32 %v2614_v58, %v609_v62 }
 0x4f7   :  { %v604_v63 = vadd.f32 1.0, %v2616_v61 }
 0x4f8   :  { %614 = vrot.lane.b32.xlu0 %v612_v59, %s2801_s9 }
 0x4f9   :  { %2617 = vrcp.f32 %v604_v63  ;;  %v3166_v63 = vld [vmem:[%s3866_s1 + $0x18] sm:$0xff] }
 0x4fa   :  { %vm29_vm4 = vcmp.ne.f32.partialorder %v3166_v63, 0.0 }
 0x503   :  { %v2618_v12 = vpop.eup %2617 }
 0x56a   :  { %v615_v10 = vpop.permute.xlu0 %614 }
 0x56b   :  { %v617_v11 = vadd.f32 %v615_v10, %v611_v9 }
 0x56d   :  { %2619 = vtanh.f32 %v617_v11  ;;  %626 = vrot.lane.b32.xlu0 %v617_v11, %s2801_s9 }
 0x577   :  { %v2620_v13 = vpop.eup %2619 }
 0x578   :  { %v619_v14 = vmul.f32 %v2620_v13, %v2618_v12 }
 0x57a   :  { %621 = vrot.lane.b32.xlu1 %v619_v14, %s2801_s9  ;;  %v932_v14 = vld [vmem:[%s3865_s0 + $0x40] sm:$0xff] }
 0x5df   :  { %v627_v16 = vpop.permute.xlu0 %626 }
 0x5e0   :  { %v3113_v17 = vsel %vm28_vm3, %v627_v16, %v3054_v39 }
 0x5e1   :  { %779 = vrot.lane.b32.xlu1 %v3113_v17, %s2801_s9 }
 0x5ec   :  { %v622_v18 = vpop.permute.xlu1 %621 }
 0x5ed   :  { %v3120_v19 = vsel %vm28_vm3, %v622_v18, %v3061_v42 }
 0x5ee   :  { %v630_v20 = vpack.c.bf16 %v3120_v19, %v3120_v19 }
 0x5f0   :  { %2400 = vmatmul.mubr.msk.bf16.vlgmr.msra.gmra.mrb[12].mxu1 %vm127_vm1, %v630_v20  ;;  %2401 = vmatmul.mubr.msk.bf16.vlgmr.msra.gmra.mrb[16].mxu0 %vm127_vm1, %v630_v20 }
 0x5f1   :  { %721 = vmatpush1.bf16.msra.mxu1 %v2839_v2  ;;  %752 = vmatprep.mubr.bf16.mxu1 %v2800_v1 }
 0x5f2   :  { %722 = vmatprep.subr.bf16.mxu1 %v2845_v3  ;;  %806 = vmatpush1.bf16.msra.mxu0 %v2897_v25 }
 0x5f3   :  { %807 = vmatprep.subr.bf16.mxu0 %v2915_v28  ;;  %837 = vmatprep.mubr.bf16.mxu0 %v2800_v1 }
 0x5f5   :  { %723 = vmatpush1.bf16.msra.mxu1 %v2851_v4 }
 0x5f6   :  { %724 = vmatprep.subr.bf16.mxu1 %v2857_v5  ;;  %808 = vmatpush1.bf16.msra.mxu0 %v2920_v29 }
 0x5f7   :  { %809 = vmatprep.subr.bf16.mxu0 %v2935_v32 }
 0x5f9   :  { %725 = vmatpush1.bf16.msra.mxu1 %v2862_v6 }
 0x5fa   :  { %726 = vmatprep.subr.bf16.mxu1 %v2867_v7  ;;  %810 = vmatpush1.bf16.msra.mxu0 %v2948_v34 }
 0x5fb   :  { %811 = vmatprep.subr.bf16.mxu0 %v2960_v37 }
 0x5fd   :  { %727 = vmatpush1.bf16.msra.mxu1 %v2874_v8 }
 0x5fe   :  { %846 = vmatprep.subr.bf16.mxu1 %v2902_v26  ;;  %812 = vmatpush1.bf16.msra.mxu0 %v2972_v40 }
 0x5ff   :  { %891 = vmatprep.subr.bf16.mxu0 %v2832_v0 }
 0x600   :  { %2402 = vmatmul.mubr.msk.bf16.vlgmr.msra.gmra.mrb[16].mxu1 %vm127_vm1, %v630_v20 }
 0x601   :  { %847 = vmatpush1.bf16.msra.mxu1 %v2907_v27  ;;  %878 = vmatprep.mubr.bf16.mxu1 %v2800_v1 }
 0x602   :  { %848 = vmatprep.subr.bf16.mxu1 %v2925_v30 }
 0x605   :  { %849 = vmatpush1.bf16.msra.mxu1 %v2930_v31 }
 0x606   :  { %850 = vmatprep.subr.bf16.mxu1 %v2942_v33 }
 0x609   :  { %851 = vmatpush1.bf16.msra.mxu1 %v2955_v36 }
 0x60a   :  { %852 = vmatprep.subr.bf16.mxu1 %v2966_v38 }
 0x60d   :  { %853 = vmatpush1.bf16.msra.mxu1 %v2980_v44 }
 0x60e   :  { %976 = vmatprep.subr.bf16.mxu1 %v2891_v23 }
 0x653   :  { %v780_v55 = vpop.permute.xlu1 %779 }
 0x6d3   :  { %v754_v22 = vpop.f32.mrb[16].mxu1 }
 0x6d4   :  { %v763_v35 = vadd.f32 %v761_v21, %v754_v22  ;;  %v756_v39 = vpop.f32.mrb[17].mxu1  ;;  %v933_v22 = vld [vmem:[%s3865_s0 + $0x48] sm:$0xff] }
 0x6d5   :  { %v758_v41 = vpop.f32.mrb[18].mxu1  ;;  %v764_v46 = vadd.f32 %v762_v45, %v756_v39 }
 0x6d6   :  { %v2403_v42 = vmul.f32 -1.442695, %v763_v35  ;;  %v759_v43 = vpop.f32.mrb[19].mxu1 }
 0x6d7   :  { %v2404_v53 = vmul.f32 -1.442695, %v764_v46 }
 0x6d8   :  { %2621 = vpow2.f32 %v2403_v42 }
 0x6d9   :  { %2623 = vtanh.f32 %v764_v46 }
 0x6e2   :  { %v2622_v47 = vpop.eup %2621 }
 0x6e3   :  { %v768_v49 = vadd.f32 1.0, %v2622_v47  ;;  %v2624_v50 = vpop.eup %2623 }
 0x6e5   :  { %2625 = vrcp.f32 %v768_v49 }
 0x6e6   :  { %2627 = vpow2.f32 %v2404_v53 }
 0x6ef   :  { %v2626_v51 = vpop.eup %2625 }
 0x6f0   :  { %v783_v52 = vmul.f32 %v2626_v51, %v2624_v50  ;;  %v2628_v54 = vpop.eup %2627  ;;  %v782_v57 = vmul.f32 %v2626_v51, %v780_v55 }
 0x6f1   :  { %v775_v56 = vadd.f32 1.0, %v2628_v54 }
 0x6f2   :  { %785 = vrot.lane.b32.xlu0 %v783_v52, %s2801_s9 }
 0x6f3   :  { %2629 = vrcp.f32 %v775_v56 }
 0x6fd   :  { %v2630_v60 = vpop.eup %2629 }
 0x764   :  { %v786_v58 = vpop.permute.xlu0 %785 }
 0x765   :  { %v788_v59 = vadd.f32 %v786_v58, %v782_v57  ;;  %v3225_v57 = vld [vmem:[%s3866_s1 + $0x20] sm:$0xff] }
 0x766   :  { %vm30_vm5 = vcmp.ne.f32.partialorder %v3225_v57, 0.0 }
 0x767   :  { %2631 = vtanh.f32 %v788_v59  ;;  %797 = vrot.lane.b32.xlu0 %v788_v59, %s2801_s9 }
 0x771   :  { %v2632_v61 = vpop.eup %2631 }
 0x772   :  { %v790_v62 = vmul.f32 %v2632_v61, %v2630_v60 }
 0x774   :  { %792 = vrot.lane.b32.xlu1 %v790_v62, %s2801_s9 }
 0x7d9   :  { %v798_v9 = vpop.permute.xlu0 %797 }
 0x7da   :  { %v3172_v10 = vsel %vm29_vm4, %v798_v9, %v3113_v17 }
 0x7db   :  { %950 = vrot.lane.b32.xlu1 %v3172_v10, %s2801_s9 }
 0x7e6   :  { %v793_v11 = vpop.permute.xlu1 %792 }
 0x7e7   :  { %v3179_v12 = vsel %vm29_vm4, %v793_v11, %v3120_v19 }
 0x7e8   :  { %v801_v13 = vpack.c.bf16 %v3179_v12, %v3179_v12 }
 0x7ea   :  { %2405 = vmatmul.mubr.msk.bf16.vlgmr.msra.gmra.mrb[20].mxu0 %vm127_vm1, %v801_v13  ;;  %2406 = vmatmul.mubr.msk.bf16.vlgmr.msra.gmra.mrb[20].mxu1 %vm127_vm1, %v801_v13 }
 0x7eb   :  { %892 = vmatpush1.bf16.msra.mxu0 %v2839_v2  ;;  %923 = vmatprep.mubr.bf16.mxu0 %v2800_v1 }
 0x7ec   :  { %893 = vmatprep.subr.bf16.mxu0 %v2845_v3  ;;  %977 = vmatpush1.bf16.msra.mxu1 %v2897_v25 }
 0x7ed   :  { %978 = vmatprep.subr.bf16.mxu1 %v2915_v28  ;;  %1008 = vmatprep.mubr.bf16.mxu1 %v2800_v1 }
 0x7ef   :  { %894 = vmatpush1.bf16.msra.mxu0 %v2851_v4 }
 0x7f0   :  { %895 = vmatprep.subr.bf16.mxu0 %v2857_v5  ;;  %979 = vmatpush1.bf16.msra.mxu1 %v2920_v29 }
 0x7f1   :  { %980 = vmatprep.subr.bf16.mxu1 %v2935_v32 }
 0x7f3   :  { %896 = vmatpush1.bf16.msra.mxu0 %v2862_v6 }
 0x7f4   :  { %897 = vmatprep.subr.bf16.mxu0 %v2867_v7  ;;  %981 = vmatpush1.bf16.msra.mxu1 %v2948_v34 }
 0x7f5   :  { %982 = vmatprep.subr.bf16.mxu1 %v2960_v37 }
 0x7f7   :  { %898 = vmatpush1.bf16.msra.mxu0 %v2874_v8 }
 0x7f8   :  { %1017 = vmatprep.subr.bf16.mxu0 %v2902_v26  ;;  %983 = vmatpush1.bf16.msra.mxu1 %v2972_v40 }
 0x7f9   :  { %1062 = vmatprep.subr.bf16.mxu1 %v2832_v0 }
 0x7fa   :  { %2407 = vmatmul.mubr.msk.bf16.vlgmr.msra.gmra.mrb[24].mxu0 %vm127_vm1, %v801_v13 }
 0x7fb   :  { %1018 = vmatpush1.bf16.msra.mxu0 %v2907_v27  ;;  %1049 = vmatprep.mubr.bf16.mxu0 %v2800_v1 }
 0x7fc   :  { %1019 = vmatprep.subr.bf16.mxu0 %v2925_v30 }
 0x7ff   :  { %1020 = vmatpush1.bf16.msra.mxu0 %v2930_v31 }
 0x800   :  { %1021 = vmatprep.subr.bf16.mxu0 %v2942_v33 }
 0x803   :  { %1022 = vmatpush1.bf16.msra.mxu0 %v2955_v36 }
 0x804   :  { %1023 = vmatprep.subr.bf16.mxu0 %v2966_v38 }
 0x807   :  { %1024 = vmatpush1.bf16.msra.mxu0 %v2980_v44 }
 0x808   :  { %1147 = vmatprep.subr.bf16.mxu0 %v2891_v23 }
 0x84d   :  { %v951_v49 = vpop.permute.xlu1 %950 }
 0x8cd   :  { %v925_v16 = vpop.f32.mrb[24].mxu0 }
 0x8ce   :  { %v934_v17 = vadd.f32 %v932_v14, %v925_v16  ;;  %v927_v18 = vpop.f32.mrb[25].mxu0 }
 0x8cf   :  { %v929_v19 = vpop.f32.mrb[26].mxu0  ;;  %v935_v35 = vadd.f32 %v933_v22, %v927_v18 }
 0x8d0   :  { %v2408_v20 = vmul.f32 -1.442695, %v934_v17  ;;  %v930_v21 = vpop.f32.mrb[27].mxu0 }
 0x8d1   :  { %v2409_v46 = vmul.f32 -1.442695, %v935_v35  ;;  %v2581_v21 = vld [vmem:[%s3864_s2 + $0x100] ss:$16 sps:$4 sm:$0xff]  }
 0x8d2   :  { %2633 = vpow2.f32 %v2408_v20 }
 0x8d3   :  { %2635 = vtanh.f32 %v935_v35 }
 0x8dc   :  { %v2634_v39 = vpop.eup %2633 }
 0x8dd   :  { %v939_v41 = vadd.f32 1.0, %v2634_v39  ;;  %v2636_v42 = vpop.eup %2635 }
 0x8df   :  { %2637 = vrcp.f32 %v939_v41 }
 0x8e0   :  { %2639 = vpow2.f32 %v2409_v46 }
 0x8e9   :  { %v2638_v43 = vpop.eup %2637 }
 0x8ea   :  { %v954_v45 = vmul.f32 %v2638_v43, %v2636_v42  ;;  %v2640_v47 = vpop.eup %2639  ;;  %v953_v51 = vmul.f32 %v2638_v43, %v951_v49 }
 0x8eb   :  { %v946_v50 = vadd.f32 1.0, %v2640_v47 }
 0x8ec   :  { %956 = vrot.lane.b32.xlu0 %v954_v45, %s2801_s9 }
 0x8ed   :  { %2641 = vrcp.f32 %v946_v50  ;;  %v1103_v50 = vld [vmem:[%s3865_s0 + $0x50] sm:$0xff] }
 0x8f7   :  { %v2642_v54 = vpop.eup %2641 }
 0x95e   :  { %v957_v52 = vpop.permute.xlu0 %956 }
 0x95f   :  { %v959_v53 = vadd.f32 %v957_v52, %v953_v51 }
 0x961   :  { %2643 = vtanh.f32 %v959_v53  ;;  %968 = vrot.lane.b32.xlu0 %v959_v53, %s2801_s9 }
 0x96b   :  { %v2644_v55 = vpop.eup %2643 }
 0x96c   :  { %v961_v56 = vmul.f32 %v2644_v55, %v2642_v54 }
 0x96e   :  { %963 = vrot.lane.b32.xlu1 %v961_v56, %s2801_s9 }
 0x9d3   :  { %v969_v58 = vpop.permute.xlu0 %968 }
 0x9d4   :  { %v3231_v59 = vsel %vm30_vm5, %v969_v58, %v3172_v10  ;;  %v1104_v58 = vld [vmem:[%s3865_s0 + $0x58] sm:$0xff] }
 0x9d5   :  { %1121 = vrot.lane.b32.xlu1 %v3231_v59, %s2801_s9 }
 0x9e0   :  { %v964_v60 = vpop.permute.xlu1 %963 }
 0x9e1   :  { %v3238_v61 = vsel %vm30_vm5, %v964_v60, %v3179_v12 }
 0x9e2   :  { %v972_v62 = vpack.c.bf16 %v3238_v61, %v3238_v61 }
 0x9e4   :  { %2410 = vmatmul.mubr.msk.bf16.vlgmr.msra.gmra.mrb[20].mxu1 %vm127_vm1, %v972_v62  ;;  %2411 = vmatmul.mubr.msk.bf16.vlgmr.msra.gmra.mrb[20].mxu0 %vm127_vm1, %v972_v62 }
 0x9e5   :  { %1063 = vmatpush1.bf16.msra.mxu1 %v2839_v2  ;;  %1094 = vmatprep.mubr.bf16.mxu1 %v2800_v1 }
 0x9e6   :  { %1064 = vmatprep.subr.bf16.mxu1 %v2845_v3  ;;  %1148 = vmatpush1.bf16.msra.mxu0 %v2897_v25 }
 0x9e7   :  { %1149 = vmatprep.subr.bf16.mxu0 %v2915_v28  ;;  %1179 = vmatprep.mubr.bf16.mxu0 %v2800_v1 }
 0x9e9   :  { %1065 = vmatpush1.bf16.msra.mxu1 %v2851_v4 }
 0x9ea   :  { %1066 = vmatprep.subr.bf16.mxu1 %v2857_v5  ;;  %1150 = vmatpush1.bf16.msra.mxu0 %v2920_v29 }
 0x9eb   :  { %1151 = vmatprep.subr.bf16.mxu0 %v2935_v32 }
 0x9ed   :  { %1067 = vmatpush1.bf16.msra.mxu1 %v2862_v6  ;;  %v74_v6 = vld [vmem:[%s3867_s3] sm:$0x3] }
 0x9ee   :  { %1068 = vmatprep.subr.bf16.mxu1 %v2867_v7  ;;  %1152 = vmatpush1.bf16.msra.mxu0 %v2948_v34 }
 0x9ef   :  { %1153 = vmatprep.subr.bf16.mxu0 %v2960_v37 }
 0x9f1   :  { %1069 = vmatpush1.bf16.msra.mxu1 %v2874_v8 }
 0x9f2   :  { %1188 = vmatprep.subr.bf16.mxu1 %v2902_v26  ;;  %1154 = vmatpush1.bf16.msra.mxu0 %v2972_v40 }
 0x9f3   :  { %1233 = vmatprep.subr.bf16.mxu0 %v2832_v0  ;;  %v77_v0 = vlaneseq }
 0x9f4   :  { %2412 = vmatmul.mubr.msk.bf16.vlgmr.msra.gmra.mrb[24].mxu1 %vm127_vm1, %v972_v62 }
 0x9f5   :  { %1189 = vmatpush1.bf16.msra.mxu1 %v2907_v27  ;;  %1220 = vmatprep.mubr.bf16.mxu1 %v2800_v1  ;;  %v78_v2 = vshrl.u32 %v77_v0, 7  ;;  %v1571_v3 = vand.u32 127, %v77_v0 }
 0x9f6   :  { %1190 = vmatprep.subr.bf16.mxu1 %v2925_v30 }
 0x9f7   :  { %v79_v4 = vsub.s32 0, %v78_v2  ;;  %v1572_v5 = vadd.s32 128, %v1571_v3  ;;  %v83_v7 = vsub.s32 1, %v78_v2  ;;  %v1573_v9 = vand.u32 32, %v1571_v3 }
 0x9f9   :  { %1191 = vmatpush1.bf16.msra.mxu1 %v2930_v31  ;;  %v3275_v10 = vrot.slane %v74_v6, %v79_v4  ;;  %v1574_v11 = vand.u32 32, %v1572_v5  ;;  %v3277_v12 = vrot.slane %v74_v6, %v83_v7  ;;  %vm3279_vm6 = vcmp.eq.s32.totalorder %v1573_v9, 0 }
 0x9fa   :  { %1192 = vmatprep.subr.bf16.mxu1 %v2942_v33 }
 0x9fb   :  { %vm3289_vm7 = vcmp.eq.s32.totalorder %v1574_v11, 0 }
 0x9fd   :  { %1193 = vmatpush1.bf16.msra.mxu1 %v2955_v36 }
 0x9fe   :  { %1194 = vmatprep.subr.bf16.mxu1 %v2966_v38 }
 0xa01   :  { %1195 = vmatpush1.bf16.msra.mxu1 %v2980_v44 }
 0xa02   :  { %1318 = vmatprep.subr.bf16.mxu1 %v2891_v23 }
 0xa47   :  { %v1122_v7 = vpop.permute.xlu1 %1121 }
 0xab7   :  { %v1010_v13 = vpop.f32.mrb[20].mxu1  ;;  %v1051_v14 = vpop.f32.mrb[20].mxu0 }
 0xab8   :  { %v3284_v17 = vadd.f32 %v1010_v13, %v3275_v10  ;;  %v3287_v18 = vadd.f32 %v1051_v14, %v3275_v10  ;;  %v1012_v19 = vpop.f32.mrb[21].mxu1  ;;  %v1053_v20 = vpop.f32.mrb[21].mxu0 }
 0xab9   :  { %v3294_v22 = vadd.f32 %v1012_v19, %v3277_v12  ;;  %v3297_v35 = vadd.f32 %v1053_v20, %v3277_v12  ;;  %v1014_v39 = vpop.f32.mrb[22].mxu1  ;;  %v1055_v41 = vpop.f32.mrb[22].mxu0 }
 0xaba   :  { %v1015_v42 = vpop.f32.mrb[23].mxu1  ;;  %v1056_v43 = vpop.f32.mrb[23].mxu0  ;;  %v1864_v45 = vsel %vm3279_vm6, %v3287_v18, %v3284_v17  ;;  %v1949_v46 = vsel %vm3279_vm6, %v3284_v17, %v3287_v18  ;;  %v3327_v41 = vld [vmem:[%s3866_s1 + $0x28] sm:$0xff] }
 0xabb   :  { %v1865_v47 = vsel %vm3289_vm7, %v3297_v35, %v3294_v22  ;;  %v1950_v49 = vsel %vm3289_vm7, %v3294_v22, %v3297_v35  ;;  %vm31_vm8 = vcmp.ne.f32.partialorder %v3327_v41, 0.0 }
 0xac7   :  { %v1096_v51 = vpop.f32.mrb[24].mxu1 }
 0xac8   :  { %v1105_v52 = vadd.f32 %v1103_v50, %v1096_v51  ;;  %v1098_v53 = vpop.f32.mrb[25].mxu1 }
 0xac9   :  { %v1100_v54 = vpop.f32.mrb[26].mxu1  ;;  %v1106_v60 = vadd.f32 %v1104_v58, %v1098_v53  ;;  %v3365_v53 = vld [vmem:[%s3864_s2 + $0xa0] ss:$16 sps:$4 sm:$0xff]  }
 0xaca   :  { %v2413_v55 = vmul.f32 -1.442695, %v1105_v52  ;;  %v1101_v56 = vpop.f32.mrb[27].mxu1  ;;  %v3371_v54 = vld [vmem:[%s3864_s2 + $0xc4] ss:$16 sps:$4 sm:$0xff]  }
 0xacb   :  { %v2414_v5 = vmul.f32 -1.442695, %v1106_v60  ;;  %v1274_v58 = vld [vmem:[%s3865_s0 + $0x60] sm:$0xff] }
 0xacc   :  { %2645 = vpow2.f32 %v2413_v55 }
 0xacd   :  { %2647 = vtanh.f32 %v1106_v60 }
 0xad6   :  { %v2646_v62 = vpop.eup %2645 }
 0xad7   :  { %v1110_v0 = vadd.f32 1.0, %v2646_v62  ;;  %v2648_v2 = vpop.eup %2647 }
 0xad9   :  { %2649 = vrcp.f32 %v1110_v0 }
 0xada   :  { %2651 = vpow2.f32 %v2414_v5  ;;  %v1275_v5 = vld [vmem:[%s3865_s0 + $0x68] sm:$0xff] }
 0xae3   :  { %v2650_v3 = vpop.eup %2649 }
 0xae4   :  { %v1125_v4 = vmul.f32 %v2650_v3, %v2648_v2  ;;  %v2652_v6 = vpop.eup %2651  ;;  %v1124_v11 = vmul.f32 %v2650_v3, %v1122_v7 }
 0xae5   :  { %v1117_v9 = vadd.f32 1.0, %v2652_v6 }
 0xae6   :  { %1127 = vrot.lane.b32.xlu0 %v1125_v4, %s2801_s9 }
 0xae7   :  { %2653 = vrcp.f32 %v1117_v9 }
 0xaf1   :  { %v2654_v19 = vpop.eup %2653 }
 0xb58   :  { %v1128_v13 = vpop.permute.xlu0 %1127 }
 0xb59   :  { %v1130_v14 = vadd.f32 %v1128_v13, %v1124_v11 }
 0xb5b   :  { %2655 = vtanh.f32 %v1130_v14  ;;  %1139 = vrot.lane.b32.xlu0 %v1130_v14, %s2801_s9 }
 0xb65   :  { %v2656_v20 = vpop.eup %2655 }
 0xb66   :  { %v1132_v39 = vmul.f32 %v2656_v20, %v2654_v19 }
 0xb68   :  { %1134 = vrot.lane.b32.xlu1 %v1132_v39, %s2801_s9 }
 0xbcd   :  { %v1140_v42 = vpop.permute.xlu0 %1139 }
 0xbce   :  { %v3333_v43 = vsel %vm31_vm8, %v1140_v42, %v3231_v59  ;;  %v3349_v59 = vld [vmem:[%s3864_s2 + $0x80] ss:$16 sps:$4 sm:$0xff]  }
 0xbcf   :  { %1292 = vrot.lane.b32.xlu1 %v3333_v43, %s2801_s9 }
 0xbda   :  { %v1135_v50 = vpop.permute.xlu1 %1134 }
 0xbdb   :  { %v3340_v51 = vsel %vm31_vm8, %v1135_v50, %v3238_v61  ;;  %v3356_v61 = vld [vmem:[%s3864_s2 + $0xa4] ss:$16 sps:$4 sm:$0xff]  }
 0xbdc   :  { %v1143_v52 = vpack.c.bf16 %v3340_v51, %v3340_v51 }
 0xbde   :  { %2415 = vmatmul.mubr.msk.bf16.vlgmr.msra.gmra.mrb[16].mxu0 %vm127_vm1, %v1143_v52  ;;  %2416 = vmatmul.mubr.msk.bf16.vlgmr.msra.gmra.mrb[12].mxu1 %vm127_vm1, %v1143_v52 }
 0xbdf   :  { %1234 = vmatpush1.bf16.msra.mxu0 %v3349_v59  ;;  %1265 = vmatprep.mubr.bf16.mxu0 %v2800_v1 }
 0xbe0   :  { %1235 = vmatprep.subr.bf16.mxu0 %v3356_v61  ;;  %1319 = vmatpush1.bf16.msra.mxu1 %v2897_v25  ;;  %v3379_v25 = vld [vmem:[%s3864_s2 + $0xc0] ss:$16 sps:$4 sm:$0xff]  }
 0xbe1   :  { %1320 = vmatprep.subr.bf16.mxu1 %v2915_v28  ;;  %1350 = vmatprep.mubr.bf16.mxu1 %v2800_v1  ;;  %v3385_v28 = vld [vmem:[%s3864_s2 + $0xe4] ss:$16 sps:$4 sm:$0xff]  }
 0xbe3   :  { %1236 = vmatpush1.bf16.msra.mxu0 %v3365_v53 }
 0xbe4   :  { %1237 = vmatprep.subr.bf16.mxu0 %v3371_v54  ;;  %1321 = vmatpush1.bf16.msra.mxu1 %v2920_v29  ;;  %v2783_v29 = vld [vmem:[%s3864_s2 + $0x84] ss:$16 sps:$4 sm:$0xff]  }
 0xbe5   :  { %1322 = vmatprep.subr.bf16.mxu1 %v2935_v32 }
 0xbe7   :  { %1238 = vmatpush1.bf16.msra.mxu0 %v3379_v25 }
 0xbe8   :  { %1239 = vmatprep.subr.bf16.mxu0 %v3385_v28  ;;  %1323 = vmatpush1.bf16.msra.mxu1 %v2948_v34 }
 0xbe9   :  { %1324 = vmatprep.subr.bf16.mxu1 %v2960_v37 }
 0xbeb   :  { %1240 = vmatpush1.bf16.msra.mxu0 %v2874_v8 }
 0xbec   :  { %1359 = vmatprep.subr.bf16.mxu0 %v2902_v26  ;;  %1325 = vmatpush1.bf16.msra.mxu1 %v2972_v40 }
 0xbed   :  { %1404 = vmatprep.subr.bf16.mxu1 %v2783_v29 }
 0xbee   :  { %2417 = vmatmul.mubr.msk.bf16.vlgmr.msra.gmra.mrb[28].mxu0 %vm127_vm1, %v1143_v52 }
 0xbef   :  { %1360 = vmatpush1.bf16.msra.mxu0 %v2907_v27  ;;  %1391 = vmatprep.mubr.bf16.mxu0 %v2800_v1 }
 0xbf0   :  { %1361 = vmatprep.subr.bf16.mxu0 %v2925_v30 }
 0xbf3   :  { %1362 = vmatpush1.bf16.msra.mxu0 %v2930_v31 }
 0xbf4   :  { %1363 = vmatprep.subr.bf16.mxu0 %v2942_v33 }
 0xbf7   :  { %1364 = vmatpush1.bf16.msra.mxu0 %v2955_v36 }
 0xbf8   :  { %1365 = vmatprep.subr.bf16.mxu0 %v2966_v38 }
 0xbfb   :  { %1366 = vmatpush1.bf16.msra.mxu0 %v2980_v44 }
 0xbfc   :  { %1484 = vmatprep.subr.bf16.mxu0 %v2891_v23 }
 0xc41   :  { %v1293_v39 = vpop.permute.xlu1 %1292 }
 0xcb1   :  { %v1181_v8 = vpop.f32.mrb[16].mxu0  ;;  %v1222_v26 = vpop.f32.mrb[12].mxu1 }
 0xcb2   :  { %v3407_v27 = vadd.f32 %v1181_v8, %v3275_v10  ;;  %v3410_v32 = vadd.f32 %v1222_v26, %v3275_v10  ;;  %v1183_v30 = vpop.f32.mrb[17].mxu0  ;;  %v1224_v31 = vpop.f32.mrb[13].mxu1 }
 0xcb3   :  { %v3413_v33 = vadd.f32 %v1183_v30, %v3277_v12  ;;  %v3416_v34 = vadd.f32 %v1224_v31, %v3277_v12  ;;  %v1185_v36 = vpop.f32.mrb[18].mxu0  ;;  %v1226_v37 = vpop.f32.mrb[14].mxu1  ;;  %v3446_v31 = vld [vmem:[%s3866_s1 + $0x30] sm:$0xff] }
 0xcb4   :  { %v1186_v38 = vpop.f32.mrb[19].mxu0  ;;  %v1227_v23 = vpop.f32.mrb[15].mxu1  ;;  %v1779_v40 = vsel %vm3279_vm6, %v3410_v32, %v3407_v27  ;;  %v2034_v44 = vsel %vm3279_vm6, %v3407_v27, %v3410_v32  ;;  %vm32_vm9 = vcmp.ne.f32.partialorder %v3446_v31, 0.0 }
 0xcb5   :  { %v1780_v55 = vsel %vm3289_vm7, %v3416_v34, %v3413_v33  ;;  %v2035_v56 = vsel %vm3289_vm7, %v3413_v33, %v3416_v34 }
 0xcc1   :  { %v1267_v60 = vpop.f32.mrb[28].mxu0 }
 0xcc2   :  { %v1276_v62 = vadd.f32 %v1274_v58, %v1267_v60  ;;  %v1269_v0 = vpop.f32.mrb[29].mxu0  ;;  %v2790_v60 = vld [vmem:[%s3864_s2 + $0xe0] ss:$16 sps:$4 sm:$0xff]  }
 0xcc3   :  { %v1271_v2 = vpop.f32.mrb[30].mxu0  ;;  %v1277_v6 = vadd.f32 %v1275_v5, %v1269_v0  ;;  %v2794_v0 = vld [vmem:[%s3864_s2 + $0x2c] ss:$16 sps:$4 sm:$0xff]  }
 0xcc4   :  { %v2418_v3 = vmul.f32 -1.442695, %v1276_v62  ;;  %v1272_v4 = vpop.f32.mrb[31].mxu0  ;;  %v2793_v62 = vld [vmem:[%s3864_s2 + $0x8] ss:$16 sps:$4 sm:$0xff]  }
 0xcc5   :  { %v2419_v19 = vmul.f32 -1.442695, %v1277_v6  ;;  %v2795_v2 = vld [vmem:[%s3864_s2 + $0x28] ss:$16 sps:$4 sm:$0xff]   ;;  %v2798_v5 = vld [vmem:[%s3864_s2 + $0x6c] ss:$16 sps:$4 sm:$0xff]  }
 0xcc6   :  { %2657 = vpow2.f32 %v2418_v3  ;;  %v2796_v3 = vld [vmem:[%s3864_s2 + $0x4c] ss:$16 sps:$4 sm:$0xff]   ;;  %v2797_v4 = vld [vmem:[%s3864_s2 + $0x48] ss:$16 sps:$4 sm:$0xff]  }
 0xcc7   :  { %2659 = vtanh.f32 %v1277_v6  ;;  %v2799_v6 = vld [vmem:[%s3864_s2 + $0x68] ss:$16 sps:$4 sm:$0xff]  }
 0xcd0   :  { %v2658_v7 = vpop.eup %2657 }
 0xcd1   :  { %v1281_v9 = vadd.f32 1.0, %v2658_v7  ;;  %v2660_v11 = vpop.eup %2659 }
 0xcd3   :  { %2661 = vrcp.f32 %v1281_v9 }
 0xcd4   :  { %2663 = vpow2.f32 %v2419_v19 }
 0xcdd   :  { %v2662_v13 = vpop.eup %2661 }
 0xcde   :  { %v1296_v14 = vmul.f32 %v2662_v13, %v2660_v11  ;;  %v2664_v20 = vpop.eup %2663  ;;  %v1295_v50 = vmul.f32 %v2662_v13, %v1293_v39 }
 0xcdf   :  { %v1288_v42 = vadd.f32 1.0, %v2664_v20 }
 0xce0   :  { %1298 = vrot.lane.b32.xlu0 %v1296_v14, %s2801_s9 }
 0xce1   :  { %2665 = vrcp.f32 %v1288_v42 }
 0xceb   :  { %v2666_v8 = vpop.eup %2665 }
 0xd52   :  { %v1299_v52 = vpop.permute.xlu0 %1298 }
 0xd53   :  { %v1301_v29 = vadd.f32 %v1299_v52, %v1295_v50 }
 0xd55   :  { %2667 = vtanh.f32 %v1301_v29  ;;  %1310 = vrot.lane.b32.xlu0 %v1301_v29, %s2801_s9 }
 0xd5f   :  { %v2668_v26 = vpop.eup %2667 }
 0xd60   :  { %v1303_v30 = vmul.f32 %v2668_v26, %v2666_v8 }
 0xd62   :  { %1305 = vrot.lane.b32.xlu1 %v1303_v30, %s2801_s9 }
 0xdc7   :  { %v1311_v36 = vpop.permute.xlu0 %1310 }
 0xdc8   :  { %v1313_v37 = vsel %vm32_vm9, %v1311_v36, %v3333_v43  ;;  %v2784_v43 = vld [vmem:[%s3864_s2] ss:$16 sps:$4 sm:$0xff]  }
 0xdc9   :  { %1463 = vrot.lane.b32.xlu1 %v1313_v37, %s2801_s9  ;;  %v1445_v37 = vld [vmem:[%s3865_s0 + $0x70] sm:$0xff] }
 0xdd4   :  { %v1306_v38 = vpop.permute.xlu1 %1305 }
 0xdd5   :  { %v3456_v23 = vsel %vm32_vm9, %v1306_v38, %v3340_v51  ;;  %v2785_v51 = vld [vmem:[%s3864_s2 + $0x24] ss:$16 sps:$4 sm:$0xff]  }
 0xdd6   :  { %v1314_v58 = vpack.c.bf16 %v3456_v23, %v3456_v23 }
 0xdd8   :  { %2420 = vmatmul.mubr.msk.bf16.vlgmr.msra.gmra.mrb[8].mxu1 %vm127_vm1, %v1314_v58  ;;  %2421 = vmatmul.mubr.msk.bf16.vlgmr.msra.gmra.mrb[8].mxu0 %vm127_vm1, %v1314_v58 }
 0xdd9   :  { %1405 = vmatpush1.bf16.msra.mxu1 %v3349_v59  ;;  %1436 = vmatprep.mubr.bf16.mxu1 %v2800_v1  ;;  %v2786_v59 = vld [vmem:[%s3864_s2 + $0x20] ss:$16 sps:$4 sm:$0xff]  }
 0xdda   :  { %1406 = vmatprep.subr.bf16.mxu1 %v3356_v61  ;;  %1485 = vmatpush1.bf16.msra.mxu0 %v2784_v43  ;;  %v2787_v61 = vld [vmem:[%s3864_s2 + $0x44] ss:$16 sps:$4 sm:$0xff]  }
 0xddb   :  { %1486 = vmatprep.subr.bf16.mxu0 %v2785_v51  ;;  %1516 = vmatprep.mubr.bf16.mxu0 %v2800_v1 }
 0xddd   :  { %1407 = vmatpush1.bf16.msra.mxu1 %v3365_v53  ;;  %v2788_v53 = vld [vmem:[%s3864_s2 + $0x40] ss:$16 sps:$4 sm:$0xff]  }
 0xdde   :  { %1408 = vmatprep.subr.bf16.mxu1 %v3371_v54  ;;  %1487 = vmatpush1.bf16.msra.mxu0 %v2786_v59  ;;  %v2789_v54 = vld [vmem:[%s3864_s2 + $0x64] ss:$16 sps:$4 sm:$0xff]  }
 0xddf   :  { %1488 = vmatprep.subr.bf16.mxu0 %v2787_v61 }
 0xde1   :  { %1409 = vmatpush1.bf16.msra.mxu1 %v3379_v25  ;;  %v2791_v25 = vld [vmem:[%s3864_s2 + $0xc] ss:$16 sps:$4 sm:$0xff]  }
 0xde2   :  { %1410 = vmatprep.subr.bf16.mxu1 %v3385_v28  ;;  %1489 = vmatpush1.bf16.msra.mxu0 %v2788_v53  ;;  %v2792_v28 = vld [vmem:[%s3864_s2 + $0x60] ss:$16 sps:$4 sm:$0xff]   ;;  %v1446_v53 = vld [vmem:[%s3865_s0 + $0x78] sm:$0xff] }
 0xde3   :  { %1490 = vmatprep.subr.bf16.mxu0 %v2789_v54 }
 0xde5   :  { %1411 = vmatpush1.bf16.msra.mxu1 %v2790_v60 }
 0xde6   :  { %1525 = vmatprep.subr.bf16.mxu1 %v2791_v25  ;;  %1491 = vmatpush1.bf16.msra.mxu0 %v2792_v28 }
 0xde8   :  { %2422 = vmatmul.mubr.msk.bf16.vlgmr.msra.gmra.mrb[28].mxu1 %vm127_vm1, %v1314_v58 }
 0xde9   :  { %1526 = vmatpush1.bf16.msra.mxu1 %v2793_v62  ;;  %1557 = vmatprep.mubr.bf16.mxu1 %v2800_v1 }
 0xdea   :  { %1527 = vmatprep.subr.bf16.mxu1 %v2794_v0 }
 0xded   :  { %1528 = vmatpush1.bf16.msra.mxu1 %v2795_v2 }
 0xdee   :  { %1529 = vmatprep.subr.bf16.mxu1 %v2796_v3 }
 0xdf1   :  { %1530 = vmatpush1.bf16.msra.mxu1 %v2797_v4 }
 0xdf2   :  { %1531 = vmatprep.subr.bf16.mxu1 %v2798_v5 }
 0xdf5   :  { %1532 = vmatpush1.bf16.msra.mxu1 %v2799_v6 }
 0xe3b   :  { %v1464_v4 = vpop.permute.xlu1 %1463 }
 0xeab   :  { %v1352_v7 = vpop.f32.mrb[8].mxu1  ;;  %v1393_v9 = vpop.f32.mrb[8].mxu0 }
 0xeac   :  { %v3521_v11 = vadd.f32 %v1352_v7, %v3275_v10  ;;  %v3524_v13 = vadd.f32 %v1393_v9, %v3275_v10  ;;  %v1354_v14 = vpop.f32.mrb[9].mxu1  ;;  %v1395_v19 = vpop.f32.mrb[9].mxu0 }
 0xead   :  { %v3527_v20 = vadd.f32 %v1354_v14, %v3277_v12  ;;  %v3530_v39 = vadd.f32 %v1395_v19, %v3277_v12  ;;  %v1356_v42 = vpop.f32.mrb[10].mxu1  ;;  %v1397_v50 = vpop.f32.mrb[10].mxu0  ;;  %v3558_v14 = vld [vmem:[%s3864_s2 + $0x8c] ss:$16 sps:$4 sm:$0xff]  }
 0xeae   :  { %v1357_v52 = vpop.f32.mrb[11].mxu1  ;;  %v1398_v29 = vpop.f32.mrb[11].mxu0  ;;  %v1694_v8 = vsel %vm3279_vm6, %v3524_v13, %v3521_v11  ;;  %v2119_v26 = vsel %vm3279_vm6, %v3521_v11, %v3524_v13  ;;  %1619 = vmatprep.subr.bf16.mxu0 %v3558_v14  ;;  %1700 = vmatprep.subr.bf16.mxu1 %v3558_v14 }
 0xeaf   :  { %v1695_v30 = vsel %vm3289_vm7, %v3530_v39, %v3527_v20  ;;  %v2120_v36 = vsel %vm3289_vm7, %v3527_v20, %v3530_v39  ;;  %v3566_v52 = vld [vmem:[%s3866_s1 + $0x38] sm:$0xff] }
 0xeb0   :  { %vm33_vm10 = vcmp.ne.f32.partialorder %v3566_v52, 0.0 }
 0xebb   :  { %v1438_v38 = vpop.f32.mrb[28].mxu1 }
 0xebc   :  { %v1447_v58 = vadd.f32 %v1445_v37, %v1438_v38  ;;  %v1440_v43 = vpop.f32.mrb[29].mxu1  ;;  %v3575_v38 = vld [vmem:[%s3864_s2 + $0x88] ss:$16 sps:$4 sm:$0xff]  }
 0xebd   :  { %v1442_v51 = vpop.f32.mrb[30].mxu1  ;;  %v1448_v54 = vadd.f32 %v1446_v53, %v1440_v43  ;;  %v3580_v43 = vld [vmem:[%s3864_s2 + $0xac] ss:$16 sps:$4 sm:$0xff]   ;;  %v3618_v53 = vld [vmem:[%s3864_s2 + $0xe8] ss:$16 sps:$4 sm:$0xff]  }
 0xebe   :  { %v2423_v59 = vmul.f32 -1.442695, %v1447_v58  ;;  %v1443_v61 = vpop.f32.mrb[31].mxu1  ;;  %v3595_v51 = vld [vmem:[%s3864_s2 + $0xcc] ss:$16 sps:$4 sm:$0xff]  }
 0xebf   :  { %v2424_v2 = vmul.f32 -1.442695, %v1448_v54  ;;  %v3610_v61 = vld [vmem:[%s3864_s2 + $0xec] ss:$16 sps:$4 sm:$0xff]  }
 0xec0   :  { %2669 = vpow2.f32 %v2423_v59  ;;  %v3604_v59 = vld [vmem:[%s3864_s2 + $0xc8] ss:$16 sps:$4 sm:$0xff]  }
 0xec1   :  { %2671 = vtanh.f32 %v1448_v54 }
 0xeca   :  { %v2670_v60 = vpop.eup %2669 }
 0xecb   :  { %v1452_v25 = vadd.f32 1.0, %v2670_v60  ;;  %v2672_v28 = vpop.eup %2671 }
 0xecd   :  { %2673 = vrcp.f32 %v1452_v25 }
 0xece   :  { %2675 = vpow2.f32 %v2424_v2 }
 0xed7   :  { %v2674_v62 = vpop.eup %2673 }
 0xed8   :  { %v1467_v0 = vmul.f32 %v2674_v62, %v2672_v28  ;;  %v2676_v3 = vpop.eup %2675  ;;  %v1466_v6 = vmul.f32 %v2674_v62, %v1464_v4 }
 0xed9   :  { %v1459_v5 = vadd.f32 1.0, %v2676_v3 }
 0xeda   :  { %1469 = vrot.lane.b32.xlu0 %v1467_v0, %s2801_s9 }
 0xedb   :  { %2677 = vrcp.f32 %v1459_v5 }
 0xee5   :  { %v2678_v19 = vpop.eup %2677 }
 0xf4c   :  { %v1470_v7 = vpop.permute.xlu0 %1469 }
 0xf4d   :  { %v1472_v9 = vadd.f32 %v1470_v7, %v1466_v6 }
 0xf4f   :  { %2679 = vtanh.f32 %v1472_v9 }
 0xf59   :  { %v2680_v42 = vpop.eup %2679 }
 0xf5a   :  { %v1474_v50 = vmul.f32 %v2680_v42, %v2678_v19 }
 0xf5c   :  { %1476 = vrot.lane.b32.xlu1 %v1474_v50, %s2801_s9 }
 0xfce   :  { %v1477_v29 = vpop.permute.xlu1 %1476 }
 0xfcf   :  { %v1479_v37 = vsel %vm33_vm10, %v1477_v29, %v3456_v23  ;;  %v3588_v23 = vld [vmem:[%s3864_s2 + $0xa8] ss:$16 sps:$4 sm:$0xff]  }
 0xfd0   :  { %v1480_v58 = vpack.c.bf16 %v1479_v37, %v1479_v37 }
 0xfd2   :  { %2425 = vmatmul.mubr.msk.bf16.vlgmr.msra.gmra.mrb[4].mxu0 %vm127_vm1, %v1480_v58  ;;  %2426 = vmatmul.mubr.msk.bf16.vlgmr.msra.gmra.mrb[0].mxu1 %vm127_vm1, %v1480_v58 }
 0xfd3   :  { %1620 = vmatpush1.bf16.msra.mxu0 %v3575_v38  ;;  %1651 = vmatprep.mubr.bf16.mxu0 %v2800_v1 }
 0xfd4   :  { %1621 = vmatprep.subr.bf16.mxu0 %v3580_v43  ;;  %1701 = vmatpush1.bf16.msra.mxu1 %v3575_v38 }
 0xfd5   :  { %1702 = vmatprep.subr.bf16.mxu1 %v3580_v43  ;;  %1732 = vmatprep.mubr.bf16.mxu1 %v2800_v1 }
 0xfd7   :  { %1622 = vmatpush1.bf16.msra.mxu0 %v3588_v23 }
 0xfd8   :  { %1623 = vmatprep.subr.bf16.mxu0 %v3595_v51  ;;  %1703 = vmatpush1.bf16.msra.mxu1 %v3588_v23 }
 0xfd9   :  { %1704 = vmatprep.subr.bf16.mxu1 %v3595_v51 }
 0xfdb   :  { %1624 = vmatpush1.bf16.msra.mxu0 %v3604_v59 }
 0xfdc   :  { %1625 = vmatprep.subr.bf16.mxu0 %v3610_v61  ;;  %1705 = vmatpush1.bf16.msra.mxu1 %v3604_v59 }
 0xfdd   :  { %1706 = vmatprep.subr.bf16.mxu1 %v3610_v61 }
 0xfdf   :  { %1626 = vmatpush1.bf16.msra.mxu0 %v3618_v53 }
 0xfe0   :  { %1707 = vmatpush1.bf16.msra.mxu1 %v3618_v53  ;;  %1785 = vmatprep.subr.bf16.mxu0 %v3558_v14 }
 0xfe1   :  { %1870 = vmatprep.subr.bf16.mxu1 %v3558_v14 }
 0xfe2   :  { %1652 = vmatmul.mubr.bf16.vlgmr.msra.gmra.mrb[32].mxu0 %v2800_v1 }
 0xfe3   :  { %1786 = vmatpush1.bf16.msra.mxu0 %v3575_v38  ;;  %1817 = vmatprep.mubr.bf16.mxu0 %v2800_v1 }
 0xfe4   :  { %1787 = vmatprep.subr.bf16.mxu0 %v3580_v43 }
 0xfe7   :  { %1788 = vmatpush1.bf16.msra.mxu0 %v3588_v23 }
 0xfe8   :  { %1789 = vmatprep.subr.bf16.mxu0 %v3595_v51 }
 0xfeb   :  { %1790 = vmatpush1.bf16.msra.mxu0 %v3604_v59 }
 0xfec   :  { %1791 = vmatprep.subr.bf16.mxu0 %v3610_v61 }
 0xfef   :  { %1792 = vmatpush1.bf16.msra.mxu0 %v3618_v53 }
 0xff0   :  { %1955 = vmatprep.subr.bf16.mxu0 %v3558_v14 }
0x10a5   :  { %v1518_v54 = vpop.f32.mrb[4].mxu0  ;;  %v1559_v60 = vpop.f32.mrb[0].mxu1 }
0x10a6   :  { %v3638_v25 = vadd.f32 %v1518_v54, %v3275_v10  ;;  %v3641_v28 = vadd.f32 %v1559_v60, %v3275_v10  ;;  %v1520_v62 = vpop.f32.mrb[5].mxu0  ;;  %v1561_v0 = vpop.f32.mrb[1].mxu1 }
0x10a7   :  { %v3644_v2 = vadd.f32 %v1520_v62, %v3277_v12  ;;  %v3647_v3 = vadd.f32 %v1561_v0, %v3277_v12  ;;  %v1522_v4 = vpop.f32.mrb[6].mxu0  ;;  %v1563_v5 = vpop.f32.mrb[2].mxu1 }
0x10a8   :  { %v1523_v6 = vpop.f32.mrb[7].mxu0  ;;  %v1564_v7 = vpop.f32.mrb[3].mxu1  ;;  %v1577_v9 = vsel %vm3279_vm6, %v3641_v28, %v3638_v25 }
0x10a9   :  { %v1578_v12 = vsel %vm3289_vm7, %v3647_v3, %v3644_v2 }
0x10b5   :  { %v1653_v42 = vpop.f32.mrb[32].mxu0 }
0x10b6   :  { %v1660_v50 = vadd.f32 %v1653_v42, %v1577_v9  ;;  %v1655_v29 = vpop.f32.mrb[33].mxu0 }
0x10b7   :  { %v1661_v37 = vadd.f32 %v1655_v29, %v1578_v12  ;;  %v1657_v58 = vpop.f32.mrb[34].mxu0 }
0x10b8   :  { %v2435_v54 = vmul.f32 -1.442695, %v1660_v50  ;;  %v1658_v60 = vpop.f32.mrb[35].mxu0 }
0x10b9   :  { %v2436_v7 = vmul.f32 -1.442695, %v1661_v37 }
0x10ba   :  { %2681 = vpow2.f32 %v2435_v54 }
0x10bb   :  { %2683 = vtanh.f32 %v1661_v37 }
0x10c4   :  { %v2682_v62 = vpop.eup %2681 }
0x10c5   :  { %v1665_v0 = vadd.f32 1.0, %v2682_v62  ;;  %v2684_v4 = vpop.eup %2683 }
0x10c7   :  { %2685 = vrcp.f32 %v1665_v0 }
0x10c8   :  { %2687 = vpow2.f32 %v2436_v7 }
0x10d1   :  { %v2686_v5 = vpop.eup %2685 }
0x10d2   :  { %v1676_v6 = vmul.f32 %v2686_v5, %v2684_v4  ;;  %v2688_v19 = vpop.eup %2687  ;;  %v1675_v9 = vmul.f32 0.0, %v2686_v5 }
0x10d3   :  { %v1672_v10 = vadd.f32 1.0, %v2688_v19 }
0x10d4   :  { %1678 = vrot.lane.b32.xlu0 %v1676_v6, %s2801_s9 }
0x10d5   :  { %2689 = vrcp.f32 %v1672_v10 }
0x10df   :  { %v2690_v50 = vpop.eup %2689 }
0x1146   :  { %v1679_v42 = vpop.permute.xlu0 %1678 }
0x1147   :  { %v1681_v12 = vadd.f32 %v1679_v42, %v1675_v9 }
0x1149   :  { %2691 = vtanh.f32 %v1681_v12  ;;  %1690 = vrot.lane.b32.xlu0 %v1681_v12, %s2801_s9 }
0x1153   :  { %v2692_v29 = vpop.eup %2691 }
0x1154   :  { %v1683_v58 = vmul.f32 %v2692_v29, %v2690_v50 }
0x1156   :  { %1685 = vrot.lane.b32.xlu1 %v1683_v58, %s2801_s9 }
0x11bb   :  { %v1691_v54 = vpop.permute.xlu0 %1690 }
0x11bc   :  { %v1693_v60 = vsel %vm26_vm0, %v1691_v54, 0.0 }
0x11bd   :  { %1757 = vrot.lane.b32.xlu1 %v1693_v60, %s2801_s9 }
0x11c8   :  { %v1686_v37 = vpop.permute.xlu1 %1685 }
0x11c9   :  { %v1688_v19 = vsel %vm26_vm0, %v1686_v37, 0.0 }
0x11ca   :  { %v1696_v62 = vpack.c.bf16 %v1688_v19, %v1688_v19 }
0x11cc   :  { %2437 = vmatmul.mubr.msk.bf16.vlgmr.msra.gmra.mrb[32].mxu1 %vm127_vm1, %v1696_v62 }
0x11cd   :  { %1871 = vmatpush1.bf16.msra.mxu1 %v3575_v38  ;;  %1902 = vmatprep.mubr.bf16.mxu1 %v2800_v1 }
0x11ce   :  { %1872 = vmatprep.subr.bf16.mxu1 %v3580_v43 }
0x11d1   :  { %1873 = vmatpush1.bf16.msra.mxu1 %v3588_v23 }
0x11d2   :  { %1874 = vmatprep.subr.bf16.mxu1 %v3595_v51 }
0x11d5   :  { %1875 = vmatpush1.bf16.msra.mxu1 %v3604_v59 }
0x11d6   :  { %1876 = vmatprep.subr.bf16.mxu1 %v3610_v61 }
0x11d9   :  { %1877 = vmatpush1.bf16.msra.mxu1 %v3618_v53 }
0x11da   :  { %2040 = vmatprep.subr.bf16.mxu1 %v3558_v14 }
0x122f   :  { %v1758_v54 = vpop.permute.xlu1 %1757 }
0x129f   :  { %v1734_v48 = vpop.f32.mrb[32].mxu1 }
0x12a0   :  { %v1741_v10 = vadd.f32 %v1734_v48, %v1694_v8  ;;  %v1736_v0 = vpop.f32.mrb[33].mxu1 }
0x12a1   :  { %v1742_v4 = vadd.f32 %v1736_v0, %v1695_v30  ;;  %v1738_v5 = vpop.f32.mrb[34].mxu1 }
0x12a2   :  { %v2438_v6 = vmul.f32 -1.442695, %v1741_v10  ;;  %v1739_v7 = vpop.f32.mrb[35].mxu1 }
0x12a3   :  { %v2439_v8 = vmul.f32 -1.442695, %v1742_v4 }
0x12a4   :  { %2693 = vpow2.f32 %v2438_v6 }
0x12a5   :  { %2695 = vtanh.f32 %v1742_v4 }
0x12ae   :  { %v2694_v9 = vpop.eup %2693 }
0x12af   :  { %v1746_v42 = vadd.f32 1.0, %v2694_v9  ;;  %v2696_v12 = vpop.eup %2695 }
0x12b1   :  { %2697 = vrcp.f32 %v1746_v42 }
0x12b2   :  { %2699 = vpow2.f32 %v2439_v8 }
0x12bb   :  { %v2698_v50 = vpop.eup %2697 }
0x12bc   :  { %v1761_v29 = vmul.f32 %v2698_v50, %v2696_v12  ;;  %v2700_v58 = vpop.eup %2699  ;;  %v1760_v62 = vmul.f32 %v2698_v50, %v1758_v54 }
0x12bd   :  { %v1753_v37 = vadd.f32 1.0, %v2700_v58 }
0x12be   :  { %1763 = vrot.lane.b32.xlu0 %v1761_v29, %s2801_s9 }
0x12bf   :  { %2701 = vrcp.f32 %v1753_v37 }
0x12c9   :  { %v2702_v10 = vpop.eup %2701 }
0x1330   :  { %v1764_v30 = vpop.permute.xlu0 %1763 }
0x1331   :  { %v1766_v48 = vadd.f32 %v1764_v30, %v1760_v62 }
0x1333   :  { %2703 = vtanh.f32 %v1766_v48  ;;  %1775 = vrot.lane.b32.xlu0 %v1766_v48, %s2801_s9 }
0x133d   :  { %v2704_v0 = vpop.eup %2703 }
0x133e   :  { %v1768_v5 = vmul.f32 %v2704_v0, %v2702_v10 }
0x1340   :  { %1770 = vrot.lane.b32.xlu1 %v1768_v5, %s2801_s9 }
0x13a5   :  { %v1776_v6 = vpop.permute.xlu0 %1775 }
0x13a6   :  { %v1778_v4 = vsel %vm27_vm2, %v1776_v6, %v1693_v60 }
0x13a7   :  { %1842 = vrot.lane.b32.xlu1 %v1778_v4, %s2801_s9 }
0x13b2   :  { %v1771_v7 = vpop.permute.xlu1 %1770 }
0x13b3   :  { %v1773_v9 = vsel %vm27_vm2, %v1771_v7, %v1688_v19 }
0x13b4   :  { %v1781_v42 = vpack.c.bf16 %v1773_v9, %v1773_v9 }
0x13b6   :  { %2440 = vmatmul.mubr.msk.bf16.vlgmr.msra.gmra.mrb[36].mxu0 %vm127_vm1, %v1781_v42 }
0x13b7   :  { %1956 = vmatpush1.bf16.msra.mxu0 %v3575_v38  ;;  %1987 = vmatprep.mubr.bf16.mxu0 %v2800_v1 }
0x13b8   :  { %1957 = vmatprep.subr.bf16.mxu0 %v3580_v43 }
0x13bb   :  { %1958 = vmatpush1.bf16.msra.mxu0 %v3588_v23 }
0x13bc   :  { %1959 = vmatprep.subr.bf16.mxu0 %v3595_v51 }
0x13bf   :  { %1960 = vmatpush1.bf16.msra.mxu0 %v3604_v59 }
0x13c0   :  { %1961 = vmatprep.subr.bf16.mxu0 %v3610_v61 }
0x13c3   :  { %1962 = vmatpush1.bf16.msra.mxu0 %v3618_v53 }
0x13c4   :  { %2125 = vmatprep.subr.bf16.mxu0 %v3558_v14 }
0x1419   :  { %v1843_v10 = vpop.permute.xlu1 %1842 }
0x1489   :  { %v1819_v24 = vpop.f32.mrb[36].mxu0 }
0x148a   :  { %v1826_v60 = vadd.f32 %v1819_v24, %v1779_v40  ;;  %v1821_v19 = vpop.f32.mrb[37].mxu0 }
0x148b   :  { %v1827_v12 = vadd.f32 %v1821_v19, %v1780_v55  ;;  %v1823_v50 = vpop.f32.mrb[38].mxu0 }
0x148c   :  { %v2441_v29 = vmul.f32 -1.442695, %v1826_v60  ;;  %v1824_v8 = vpop.f32.mrb[39].mxu0 }
0x148d   :  { %v2442_v40 = vmul.f32 -1.442695, %v1827_v12 }
0x148e   :  { %2705 = vpow2.f32 %v2441_v29 }
0x148f   :  { %2707 = vtanh.f32 %v1827_v12 }
0x1498   :  { %v2706_v58 = vpop.eup %2705 }
0x1499   :  { %v1831_v54 = vadd.f32 1.0, %v2706_v58  ;;  %v2708_v37 = vpop.eup %2707 }
0x149b   :  { %2709 = vrcp.f32 %v1831_v54 }
0x149c   :  { %2711 = vpow2.f32 %v2442_v40 }
0x14a5   :  { %v2710_v62 = vpop.eup %2709 }
0x14a6   :  { %v1846_v30 = vmul.f32 %v2710_v62, %v2708_v37  ;;  %v2712_v48 = vpop.eup %2711  ;;  %v1845_v5 = vmul.f32 %v2710_v62, %v1843_v10 }
0x14a7   :  { %v1838_v0 = vadd.f32 1.0, %v2712_v48 }
0x14a8   :  { %1848 = vrot.lane.b32.xlu0 %v1846_v30, %s2801_s9 }
0x14a9   :  { %2713 = vrcp.f32 %v1838_v0 }
0x14b3   :  { %v2714_v7 = vpop.eup %2713 }
0x151a   :  { %v1849_v55 = vpop.permute.xlu0 %1848 }
0x151b   :  { %v1851_v6 = vadd.f32 %v1849_v55, %v1845_v5 }
0x151d   :  { %2715 = vtanh.f32 %v1851_v6  ;;  %1860 = vrot.lane.b32.xlu0 %v1851_v6, %s2801_s9 }
0x1527   :  { %v2716_v42 = vpop.eup %2715 }
0x1528   :  { %v1853_v24 = vmul.f32 %v2716_v42, %v2714_v7 }
0x152a   :  { %1855 = vrot.lane.b32.xlu1 %v1853_v24, %s2801_s9 }
0x158f   :  { %v1861_v60 = vpop.permute.xlu0 %1860 }
0x1590   :  { %v1863_v19 = vsel %vm28_vm3, %v1861_v60, %v1778_v4 }
0x1591   :  { %1927 = vrot.lane.b32.xlu1 %v1863_v19, %s2801_s9 }
0x159c   :  { %v1856_v12 = vpop.permute.xlu1 %1855 }
0x159d   :  { %v1858_v50 = vsel %vm28_vm3, %v1856_v12, %v1773_v9 }
0x159e   :  { %v1866_v29 = vpack.c.bf16 %v1858_v50, %v1858_v50 }
0x15a0   :  { %2443 = vmatmul.mubr.msk.bf16.vlgmr.msra.gmra.mrb[36].mxu1 %vm127_vm1, %v1866_v29 }
0x15a1   :  { %2041 = vmatpush1.bf16.msra.mxu1 %v3575_v38  ;;  %2072 = vmatprep.mubr.bf16.mxu1 %v2800_v1 }
0x15a2   :  { %2042 = vmatprep.subr.bf16.mxu1 %v3580_v43 }
0x15a5   :  { %2043 = vmatpush1.bf16.msra.mxu1 %v3588_v23 }
0x15a6   :  { %2044 = vmatprep.subr.bf16.mxu1 %v3595_v51 }
0x15a9   :  { %2045 = vmatpush1.bf16.msra.mxu1 %v3604_v59 }
0x15aa   :  { %2046 = vmatprep.subr.bf16.mxu1 %v3610_v61 }
0x15ad   :  { %2047 = vmatpush1.bf16.msra.mxu1 %v3618_v53 }
0x15ae   :  { %2210 = vmatprep.subr.bf16.mxu1 %v3558_v14 }
0x1603   :  { %v1928_v0 = vpop.permute.xlu1 %1927 }
0x1673   :  { %v1904_v15 = vpop.f32.mrb[36].mxu1 }
0x1674   :  { %v1911_v4 = vadd.f32 %v1904_v15, %v1864_v45  ;;  %v1906_v9 = vpop.f32.mrb[37].mxu1 }
0x1675   :  { %v1912_v8 = vadd.f32 %v1906_v9, %v1865_v47  ;;  %v1908_v58 = vpop.f32.mrb[38].mxu1 }
0x1676   :  { %v2444_v54 = vmul.f32 -1.442695, %v1911_v4  ;;  %v1909_v37 = vpop.f32.mrb[39].mxu1 }
0x1677   :  { %v2445_v45 = vmul.f32 -1.442695, %v1912_v8 }
0x1678   :  { %2717 = vpow2.f32 %v2444_v54 }
0x1679   :  { %2719 = vtanh.f32 %v1912_v8 }
0x1682   :  { %v2718_v62 = vpop.eup %2717 }
0x1683   :  { %v1916_v14 = vadd.f32 1.0, %v2718_v62  ;;  %v2720_v30 = vpop.eup %2719 }
0x1685   :  { %2721 = vrcp.f32 %v1916_v14 }
0x1686   :  { %2723 = vpow2.f32 %v2445_v45 }
0x168f   :  { %v2722_v40 = vpop.eup %2721 }
0x1690   :  { %v1931_v48 = vmul.f32 %v2722_v40, %v2720_v30  ;;  %v2724_v10 = vpop.eup %2723  ;;  %v1930_v55 = vmul.f32 %v2722_v40, %v1928_v0 }
0x1691   :  { %v1923_v5 = vadd.f32 1.0, %v2724_v10 }
0x1692   :  { %1933 = vrot.lane.b32.xlu0 %v1931_v48, %s2801_s9 }
0x1693   :  { %2725 = vrcp.f32 %v1923_v5 }
0x169d   :  { %v2726_v7 = vpop.eup %2725 }
0x1704   :  { %v1934_v47 = vpop.permute.xlu0 %1933 }
0x1705   :  { %v1936_v6 = vadd.f32 %v1934_v47, %v1930_v55 }
0x1707   :  { %2727 = vtanh.f32 %v1936_v6  ;;  %1945 = vrot.lane.b32.xlu0 %v1936_v6, %s2801_s9 }
0x1711   :  { %v2728_v42 = vpop.eup %2727 }
0x1712   :  { %v1938_v24 = vmul.f32 %v2728_v42, %v2726_v7 }
0x1714   :  { %1940 = vrot.lane.b32.xlu1 %v1938_v24, %s2801_s9 }
0x1779   :  { %v1946_v60 = vpop.permute.xlu0 %1945 }
0x177a   :  { %v1948_v12 = vsel %vm29_vm4, %v1946_v60, %v1863_v19 }
0x177b   :  { %2012 = vrot.lane.b32.xlu1 %v1948_v12, %s2801_s9 }
0x1786   :  { %v1941_v29 = vpop.permute.xlu1 %1940 }
0x1787   :  { %v1943_v15 = vsel %vm29_vm4, %v1941_v29, %v1858_v50 }
0x1788   :  { %v1951_v4 = vpack.c.bf16 %v1943_v15, %v1943_v15 }
0x178a   :  { %2446 = vmatmul.mubr.msk.bf16.vlgmr.msra.gmra.mrb[40].mxu0 %vm127_vm1, %v1951_v4 }
0x178b   :  { %2126 = vmatpush1.bf16.msra.mxu0 %v3575_v38  ;;  %2157 = vmatprep.mubr.bf16.mxu0 %v2800_v1 }
0x178c   :  { %2127 = vmatprep.subr.bf16.mxu0 %v3580_v43 }
0x178f   :  { %2128 = vmatpush1.bf16.msra.mxu0 %v3588_v23 }
0x1790   :  { %2129 = vmatprep.subr.bf16.mxu0 %v3595_v51 }
0x1793   :  { %2130 = vmatpush1.bf16.msra.mxu0 %v3604_v59 }
0x1794   :  { %2131 = vmatprep.subr.bf16.mxu0 %v3610_v61 }
0x1797   :  { %2132 = vmatpush1.bf16.msra.mxu0 %v3618_v53 }
0x185d   :  { %v1989_v63 = vpop.f32.mrb[40].mxu0 }
0x185e   :  { %v1996_v19 = vadd.f32 %v1989_v63, %v1949_v46  ;;  %v1991_v50 = vpop.f32.mrb[41].mxu0  ;;  %v2013_v46 = vpop.permute.xlu1 %2012 }
0x185f   :  { %v1997_v9 = vadd.f32 %v1991_v50, %v1950_v49  ;;  %v1993_v8 = vpop.f32.mrb[42].mxu0 }
0x1860   :  { %v2447_v58 = vmul.f32 -1.442695, %v1996_v19  ;;  %v1994_v54 = vpop.f32.mrb[43].mxu0 }
0x1861   :  { %v2448_v17 = vmul.f32 -1.442695, %v1997_v9 }
0x1862   :  { %2729 = vpow2.f32 %v2447_v58 }
0x1863   :  { %2731 = vtanh.f32 %v1997_v9 }
0x186c   :  { %v2730_v37 = vpop.eup %2729 }
0x186d   :  { %v2001_v62 = vadd.f32 1.0, %v2730_v37  ;;  %v2732_v14 = vpop.eup %2731 }
0x186f   :  { %2733 = vrcp.f32 %v2001_v62 }
0x1870   :  { %2735 = vpow2.f32 %v2448_v17 }
0x1879   :  { %v2734_v30 = vpop.eup %2733 }
0x187a   :  { %v2016_v40 = vmul.f32 %v2734_v30, %v2732_v14  ;;  %v2736_v18 = vpop.eup %2735  ;;  %v2015_v22 = vmul.f32 %v2734_v30, %v2013_v46 }
0x187b   :  { %v2008_v48 = vadd.f32 1.0, %v2736_v18 }
0x187c   :  { %2018 = vrot.lane.b32.xlu0 %v2016_v40, %s2801_s9 }
0x187d   :  { %2737 = vrcp.f32 %v2008_v48 }
0x1887   :  { %v2738_v45 = vpop.eup %2737 }
0x18ee   :  { %v2019_v35 = vpop.permute.xlu0 %2018 }
0x18ef   :  { %v2021_v49 = vadd.f32 %v2019_v35, %v2015_v22 }
0x18f1   :  { %2739 = vtanh.f32 %v2021_v49  ;;  %2030 = vrot.lane.b32.xlu0 %v2021_v49, %s2801_s9 }
0x18fb   :  { %v2740_v10 = vpop.eup %2739 }
0x18fc   :  { %v2023_v0 = vmul.f32 %v2740_v10, %v2738_v45 }
0x18fe   :  { %2025 = vrot.lane.b32.xlu1 %v2023_v0, %s2801_s9 }
0x1963   :  { %v2031_v5 = vpop.permute.xlu0 %2030 }
0x1964   :  { %v2033_v55 = vsel %vm30_vm5, %v2031_v5, %v1948_v12 }
0x1965   :  { %2097 = vrot.lane.b32.xlu1 %v2033_v55, %s2801_s9 }
0x1970   :  { %v2026_v47 = vpop.permute.xlu1 %2025 }
0x1971   :  { %v2028_v6 = vsel %vm30_vm5, %v2026_v47, %v1943_v15 }
0x1972   :  { %v2036_v7 = vpack.c.bf16 %v2028_v6, %v2028_v6 }
0x1974   :  { %2449 = vmatmul.mubr.msk.bf16.vlgmr.msra.gmra.mrb[40].mxu1 %vm127_vm1, %v2036_v7  ;;  %v3873_v7 = vsel %vm3279_vm6, %v3638_v25, %v3641_v28  ;;  %v2802_v25 = vmov 0.0   ;;  %v2582_v28 = vld [vmem:[%s3864_s2 + $0x120] ss:$16 sps:$4 sm:$0xff]  }
0x1975   :  { %2211 = vmatpush1.bf16.msra.mxu1 %v3575_v38  ;;  %2242 = vmatprep.mubr.bf16.mxu1 %v2800_v1 }
0x1976   :  { %2212 = vmatprep.subr.bf16.mxu1 %v3580_v43  ;;  %2469 = vmatprep.subr.bf16.mxu0 %v2802_v25 }
0x1979   :  { %2213 = vmatpush1.bf16.msra.mxu1 %v3588_v23 }
0x197a   :  { %2214 = vmatprep.subr.bf16.mxu1 %v3595_v51 }
0x197d   :  { %2215 = vmatpush1.bf16.msra.mxu1 %v3604_v59 }
0x197e   :  { %2216 = vmatprep.subr.bf16.mxu1 %v3610_v61 }
0x1981   :  { %2217 = vmatpush1.bf16.msra.mxu1 %v3618_v53 }
0x1a47   :  { %v2074_v57 = vpop.f32.mrb[40].mxu1 }
0x1a48   :  { %v2081_v38 = vadd.f32 %v2074_v57, %v2034_v44  ;;  %v2076_v1 = vpop.f32.mrb[41].mxu1  ;;  %v2098_v44 = vpop.permute.xlu1 %2097 }
0x1a49   :  { %v2082_v43 = vadd.f32 %v2076_v1, %v2035_v56  ;;  %v2078_v23 = vpop.f32.mrb[42].mxu1  ;;  %v3874_v1 = vsel %vm3289_vm7, %v3644_v2, %v3647_v3  ;;  %v2583_v2 = vld [vmem:[%s3864_s2 + $0x140] ss:$16 sps:$4 sm:$0xff]  }
0x1a4a   :  { %v2450_v51 = vmul.f32 -1.442695, %v2081_v38  ;;  %v2079_v59 = vpop.f32.mrb[43].mxu1 }
0x1a4b   :  { %v2451_v27 = vmul.f32 -1.442695, %v2082_v43 }
0x1a4c   :  { %2741 = vpow2.f32 %v2450_v51 }
0x1a4d   :  { %2743 = vtanh.f32 %v2082_v43 }
0x1a56   :  { %v2742_v61 = vpop.eup %2741 }
0x1a57   :  { %v2086_v53 = vadd.f32 1.0, %v2742_v61  ;;  %v2744_v42 = vpop.eup %2743 }
0x1a59   :  { %2745 = vrcp.f32 %v2086_v53 }
0x1a5a   :  { %2747 = vpow2.f32 %v2451_v27 }
0x1a63   :  { %v2746_v24 = vpop.eup %2745 }
0x1a64   :  { %v2101_v60 = vmul.f32 %v2746_v24, %v2744_v42  ;;  %v2748_v32 = vpop.eup %2747  ;;  %v2100_v33 = vmul.f32 %v2746_v24, %v2098_v44 }
0x1a65   :  { %v2093_v12 = vadd.f32 1.0, %v2748_v32 }
0x1a66   :  { %2103 = vrot.lane.b32.xlu0 %v2101_v60, %s2801_s9 }
0x1a67   :  { %2749 = vrcp.f32 %v2093_v12 }
0x1a71   :  { %v2750_v29 = vpop.eup %2749 }
0x1ad8   :  { %v2104_v34 = vpop.permute.xlu0 %2103 }
0x1ad9   :  { %v2106_v56 = vadd.f32 %v2104_v34, %v2100_v33  ;;  %v2584_v33 = vld [vmem:[%s3864_s2 + $0x160] ss:$16 sps:$4 sm:$0xff]  }
0x1adb   :  { %2751 = vtanh.f32 %v2106_v56  ;;  %2115 = vrot.lane.b32.xlu0 %v2106_v56, %s2801_s9 }
0x1ae5   :  { %v2752_v15 = vpop.eup %2751 }
0x1ae6   :  { %v2108_v4 = vmul.f32 %v2752_v15, %v2750_v29 }
0x1ae8   :  { %2110 = vrot.lane.b32.xlu1 %v2108_v4, %s2801_s9 }
0x1b4d   :  { %v2116_v63 = vpop.permute.xlu0 %2115 }
0x1b4e   :  { %v2118_v19 = vsel %vm31_vm8, %v2116_v63, %v2033_v55 }
0x1b4f   :  { %2182 = vrot.lane.b32.xlu1 %v2118_v19, %s2801_s9 }
0x1b5a   :  { %v2111_v50 = vpop.permute.xlu1 %2110 }
0x1b5b   :  { %v2113_v9 = vsel %vm31_vm8, %v2111_v50, %v2028_v6 }
0x1b5c   :  { %v2121_v8 = vpack.c.bf16 %v2113_v9, %v2113_v9 }
0x1b5e   :  { %2452 = vmatmul.mubr.msk.bf16.vlgmr.msra.gmra.mrb[44].mxu0 %vm127_vm1, %v2121_v8 }
0x1b5f   :  { %2470 = vmatpush3.bf16.msra.mxu0 %v2581_v21  ;;  %2477 = vmatprep.mubr.msk.bf16.mxu0 %vm2803_vm11, %v2802_v25 }
0x1b60   :  { %2471 = vmatprep.subr.bf16.mxu0 %v2802_v25 }
0x1b63   :  { %2472 = vmatpush3.bf16.msra.mxu0 %v2582_v28 }
0x1b64   :  { %2473 = vmatprep.subr.bf16.mxu0 %v2802_v25 }
0x1b67   :  { %2474 = vmatpush3.bf16.msra.mxu0 %v2583_v2 }
0x1b68   :  { %2475 = vmatprep.subr.bf16.mxu0 %v2802_v25 }
0x1b6b   :  { %2476 = vmatpush3.bf16.msra.mxu0 %v2584_v33 }
0x1c31   :  { %v2159_v58 = vpop.f32.mrb[44].mxu0 }
0x1c32   :  { %v2166_v54 = vadd.f32 %v2159_v58, %v2119_v26  ;;  %v2161_v37 = vpop.f32.mrb[45].mxu0  ;;  %v2183_v26 = vpop.permute.xlu1 %2182 }
0x1c33   :  { %v2167_v62 = vadd.f32 %v2161_v37, %v2120_v36  ;;  %v2163_v14 = vpop.f32.mrb[46].mxu0 }
0x1c34   :  { %v2453_v41 = vmul.f32 -1.442695, %v2166_v54  ;;  %v2164_v30 = vpop.f32.mrb[47].mxu0 }
0x1c35   :  { %v2454_v11 = vmul.f32 -1.442695, %v2167_v62 }
0x1c36   :  { %2753 = vpow2.f32 %v2453_v41 }
0x1c37   :  { %2755 = vtanh.f32 %v2167_v62 }
0x1c40   :  { %v2754_v40 = vpop.eup %2753 }
0x1c41   :  { %v2171_v17 = vadd.f32 1.0, %v2754_v40  ;;  %v2756_v18 = vpop.eup %2755 }
0x1c43   :  { %2757 = vrcp.f32 %v2171_v17 }
0x1c44   :  { %2759 = vpow2.f32 %v2454_v11 }
0x1c4d   :  { %v2758_v46 = vpop.eup %2757 }
0x1c4e   :  { %v2186_v48 = vmul.f32 %v2758_v46, %v2756_v18  ;;  %v2760_v13 = vpop.eup %2759  ;;  %v2185_v20 = vmul.f32 %v2758_v46, %v2183_v26 }
0x1c4f   :  { %v2178_v22 = vadd.f32 1.0, %v2760_v13 }
0x1c50   :  { %2188 = vrot.lane.b32.xlu0 %v2186_v48, %s2801_s9 }
0x1c51   :  { %2761 = vrcp.f32 %v2178_v22 }
0x1c5b   :  { %v2762_v35 = vpop.eup %2761 }
0x1cc2   :  { %v2189_v39 = vpop.permute.xlu0 %2188 }
0x1cc3   :  { %v2191_v36 = vadd.f32 %v2189_v39, %v2185_v20 }
0x1cc5   :  { %2763 = vtanh.f32 %v2191_v36  ;;  %2200 = vrot.lane.b32.xlu0 %v2191_v36, %s2801_s9 }
0x1ccf   :  { %v2764_v49 = vpop.eup %2763 }
0x1cd0   :  { %v2193_v45 = vmul.f32 %v2764_v49, %v2762_v35 }
0x1cd2   :  { %2195 = vrot.lane.b32.xlu1 %v2193_v45, %s2801_s9 }
0x1d37   :  { %v2201_v10 = vpop.permute.xlu0 %2200 }
0x1d38   :  { %v2203_v0 = vsel %vm32_vm9, %v2201_v10, %v2118_v19  ;;  %v2458_v19 = vld [vmem:[%s3867_s3 + $0x2] ss:$0 sm:$0xff] }
0x1d39   :  { %2267 = vrot.lane.b32.xlu1 %v2203_v0, %s2801_s9 }
0x1d44   :  { %v2196_v5 = vpop.permute.xlu1 %2195 }
0x1d45   :  { %v2198_v55 = vsel %vm32_vm9, %v2196_v5, %v2113_v9 }
0x1d46   :  { %v2206_v47 = vpack.c.bf16 %v2198_v55, %v2198_v55 }
0x1d48   :  { %2455 = vmatmul.mubr.msk.bf16.vlgmr.msra.gmra.mrb[44].mxu1 %vm127_vm1, %v2206_v47 }
0x1dab   :  { %v2268_v60 = vpop.permute.xlu1 %2267 }
0x1e1b   :  { %v2244_v6 = vpop.f32.mrb[44].mxu1 }
0x1e1c   :  { %v2251_v57 = vadd.f32 %v2244_v6, %v3873_v7  ;;  %v2246_v38 = vpop.f32.mrb[45].mxu1 }
0x1e1d   :  { %v2252_v43 = vadd.f32 %v2246_v38, %v3874_v1  ;;  %v2248_v23 = vpop.f32.mrb[46].mxu1 }
0x1e1e   :  { %v2456_v31 = vmul.f32 -1.442695, %v2251_v57  ;;  %v2249_v51 = vpop.f32.mrb[47].mxu1 }
0x1e1f   :  { %v2457_v3 = vmul.f32 -1.442695, %v2252_v43 }
0x1e20   :  { %2765 = vpow2.f32 %v2456_v31 }
0x1e21   :  { %2767 = vtanh.f32 %v2252_v43 }
0x1e2a   :  { %v2766_v59 = vpop.eup %2765 }
0x1e2b   :  { %v2256_v61 = vadd.f32 1.0, %v2766_v59  ;;  %v2768_v16 = vpop.eup %2767 }
0x1e2d   :  { %2769 = vrcp.f32 %v2256_v61 }
0x1e2e   :  { %2771 = vpow2.f32 %v2457_v3 }
0x1e37   :  { %v2770_v53 = vpop.eup %2769 }
0x1e38   :  { %v2271_v42 = vmul.f32 %v2770_v53, %v2768_v16  ;;  %v2772_v24 = vpop.eup %2771  ;;  %v2270_v32 = vmul.f32 %v2770_v53, %v2268_v60 }
0x1e39   :  { %v2263_v27 = vadd.f32 1.0, %v2772_v24 }
0x1e3a   :  { %2273 = vrot.lane.b32.xlu0 %v2271_v42, %s2801_s9 }
0x1e3b   :  { %2773 = vrcp.f32 %v2263_v27 }
0x1e45   :  { %v2774_v34 = vpop.eup %2773 }
0x1eac   :  { %v2274_v44 = vpop.permute.xlu0 %2273 }
0x1ead   :  { %v2276_v12 = vadd.f32 %v2274_v44, %v2270_v32 }
0x1eaf   :  { %2775 = vtanh.f32 %v2276_v12 }
0x1eb9   :  { %v2776_v56 = vpop.eup %2775 }
0x1eba   :  { %v2278_v29 = vmul.f32 %v2776_v56, %v2774_v34 }
0x1ebc   :  { %2280 = vrot.lane.b32.xlu1 %v2278_v29, %s2801_s9 }
0x1f2e   :  { %v2281_v15 = vpop.permute.xlu1 %2280 }
0x1f2f   :  { %v2283_v4 = vsel %vm33_vm10, %v2281_v15, %v2198_v55 }
0x1f30   :  { %v2284_v63 = vpack.c.bf16 %v2283_v4, %v2283_v4 }
0x1f32   :  { %2478 = vmatmul.mubr.msk.bf16.vlgmr.msra.gmra.mrb[48].mxu0 %vm127_vm1, %v2284_v63 }
0x2005   :  { %v2352_v50 = vpop.f32.mrb[48].mxu0 }
0x2006   :  { %v2353_v9 = vadd.f32 %v2458_v19, %v2352_v50  ;;  %v2479_v8 = vpop.f32.mrb[49].mxu0 }
0x2007   :  { %v2355_v58 = vpop.f32.mrb[50].mxu0 }
0x2008   :  { %v2358_v54 = vmax.f32 %v2353_v9, 0.0  ;;  %v2480_v37 = vpop.f32.mrb[51].mxu0 }
0x200a   :  { %2359 = vst [vmem:[%s3868_s4] sm:$0xff] %v2358_v54 }

</bundles_post_ra>
